<compile_context>
chip_gen: v7x
topology: tpu7x:2x2x1
jax: 0.10.0
libtpu: 0.0.40
codegen_flags: <defaults>
</compile_context>

<pallas_src>
from functools import partial

import numpy as np
import jax
import jax.numpy as jnp
from jax.experimental import pallas as pl
from jax.experimental.pallas import tpu as pltpu

EPS = 1e-6          # LlamaRMSNorm default eps
NEG_INF = -1e9      # additive mask value (finite, like torch.finfo.min)
IGNORE_INDEX = -100


# ----------------------------------------------------------------------------
# Small helpers: tile picking, rounding, VMEM sizing, single-buffer probing
# ----------------------------------------------------------------------------
def _pick_tile(n, preferred):
    """Largest preferred tile that evenly divides n, else the full extent."""
    for c in preferred:
        if c <= n and n % c == 0:
            return c
    return n


def _round_up(n, m):
    return -(-n // m) * m


_VMEM_CAP = None


def _vmem_cap_bytes():
    """Physical VMEM capacity (128 MiB on v5e/v6e, 64 MiB on v7x); conservative fallback."""
    global _VMEM_CAP
    if _VMEM_CAP is None:
        cap = None
        try:
            info = pltpu.get_tpu_info()
            cap = getattr(info, "vmem_capacity_bytes", None)
        except Exception:
            cap = None
        _VMEM_CAP = int(cap) if cap else 64 * 1024 * 1024
    return _VMEM_CAP


def _params(dim_sem):
    cap = _vmem_cap_bytes()
    return pltpu.CompilerParams(
        dimension_semantics=dim_sem,
        vmem_limit_bytes=min(100 * 1024 * 1024, int(cap * 0.9)),
    )


def _probe_kernel(x_ref, o_ref):
    o_ref[...] = x_ref[...]


_SINGLE_BUFFER_OK = None


def _single_buffer_supported():
    """Probe whether pipeline_mode=pl.Buffered(1) is supported end-to-end."""
    global _SINGLE_BUFFER_OK
    if _SINGLE_BUFFER_OK is None:
        try:
            spec = pl.BlockSpec((8, 128), lambda i: (0, 0), pipeline_mode=pl.Buffered(1))
            fn = pl.pallas_call(
                _probe_kernel,
                out_shape=jax.ShapeDtypeStruct((8, 128), jnp.float32),
                grid=(2,),
                in_specs=[spec],
                out_specs=pl.BlockSpec((8, 128), lambda i: (0, 0)),
            )
            jax.block_until_ready(fn(jnp.zeros((8, 128), jnp.float32)))
            _SINGLE_BUFFER_OK = True
        except Exception:
            _SINGLE_BUFFER_OK = False
    return _SINGLE_BUFFER_OK


def _const_spec(shape, index_map):
    """BlockSpec for grid-invariant (weight) operands: single-buffer them so big resident
    weights are not double-buffered in VMEM (critical on v7x's 64 MiB)."""
    if _single_buffer_supported():
        return pl.BlockSpec(shape, index_map, pipeline_mode=pl.Buffered(1))
    return pl.BlockSpec(shape, index_map)


# ----------------------------------------------------------------------------
# Kernel 1: fused local-RMSNorm + proj (+bias) + input_layernorm + QKV + RoPE
#   grid=(B, rows); weights single-buffered; RoPE via two lane rolls + select on flat D.
# ----------------------------------------------------------------------------
def _proj_qkv_kernel(x_ref, cos_ref, sin_ref, gl_ref, wp_ref, bp_ref, g1_ref, wqkv_ref,
                     f_ref, q_ref, k_ref, v_ref, *, D, head_dim):
    x = x_ref[0].astype(jnp.float32)                       # (tr, D), f32 stats
    var = jnp.mean(x * x, axis=-1, keepdims=True)
    xn = (x * jax.lax.rsqrt(var + EPS) * gl_ref[...]).astype(jnp.bfloat16)

    feats = jnp.dot(xn, wp_ref[...], preferred_element_type=jnp.float32) + bp_ref[...]
    f_ref[0] = feats.astype(jnp.bfloat16)                  # residual for attention

    var2 = jnp.mean(feats * feats, axis=-1, keepdims=True)
    fn = (feats * jax.lax.rsqrt(var2 + EPS) * g1_ref[...]).astype(jnp.bfloat16)
    qkv = jnp.dot(fn, wqkv_ref[...], preferred_element_type=jnp.float32)   # (tr, 3D)

    # RoPE on the flat (tr, D) layout: rotate_half per head == two full-width lane rolls
    # selected by (lane % head_dim), sign folded into the sin table (XLU only, no reshape).
    cos = cos_ref[...]
    sin = sin_ref[...]
    half = head_dim // 2
    lane = jax.lax.broadcasted_iota(jnp.int32, (x.shape[0], D), 1)
    upper = (lane % head_dim) >= half

    def rope(t):
        rot = jnp.where(upper,
                        pltpu.roll(t, half, axis=1),
                        pltpu.roll(t, D - half, axis=1))
        return (t * cos + rot * sin).astype(jnp.bfloat16)

    q_ref[0] = rope(qkv[:, :D])
    k_ref[0] = rope(qkv[:, D:2 * D])
    v_ref[0] = qkv[:, 2 * D:].astype(jnp.bfloat16)


def proj_qkv(x, cos, sin, p, head_dim):
    B, T, D = x.shape
    tr = _pick_tile(T, (256, 128))
    kernel = partial(_proj_qkv_kernel, D=D, head_dim=head_dim)
    out_shapes = tuple(jax.ShapeDtypeStruct((B, T, D), jnp.bfloat16) for _ in range(4))
    return pl.pallas_call(
        kernel,
        out_shape=out_shapes,
        grid=(B, T // tr),
        in_specs=[
            pl.BlockSpec((1, tr, D), lambda b, r: (b, r, 0)),
            pl.BlockSpec((tr, D), lambda b, r: (r, 0)),        # cos
            pl.BlockSpec((tr, D), lambda b, r: (r, 0)),        # sin (sign-folded)
            _const_spec((1, D), lambda b, r: (0, 0)),          # local RMSNorm gamma
            _const_spec((D, D), lambda b, r: (0, 0)),          # proj weight
            _const_spec((1, D), lambda b, r: (0, 0)),          # proj bias
            _const_spec((1, D), lambda b, r: (0, 0)),          # input_layernorm gamma
            _const_spec((D, 3 * D), lambda b, r: (0, 0)),      # fused QKV weight
        ],
        out_specs=tuple(pl.BlockSpec((1, tr, D), lambda b, r: (b, r, 0)) for _ in range(4)),
        compiler_params=_params(("parallel", "parallel")),
    )(x, cos, sin, p["gl"], p["wp_t"], p["bp"], p["g1"], p["wqkv_t"])


# ----------------------------------------------------------------------------
# Kernel 2: flash attention + per-head out-projection + residual
#   grid=(B, q-tiles, heads, kv-tiles); heads and kv are reductions (arbitrary, last).
#   Scores are (tq, tk) per step; normalization happens after PV; ctx @ wo_h accumulates
#   into a (tq, D) output scratch preloaded with the residual.
# ----------------------------------------------------------------------------
def _flash_attn_kernel(feats_ref, q_ref, k_ref, v_ref, pb_ref, wo_ref, o_ref,
                       m_sc, l_sc, acc_sc, oacc_sc, *, scale):
    qi = pl.program_id(1)
    h = pl.program_id(2)
    ki = pl.program_id(3)
    nh = pl.num_programs(2)
    nk = pl.num_programs(3)

    @pl.when(jnp.logical_and(h == 0, ki == 0))
    def _():
        oacc_sc[...] = feats_ref[0].astype(jnp.float32)     # residual preloaded

    @pl.when(ki == 0)
    def _():
        m_sc[...] = jnp.full_like(m_sc, -jnp.inf)
        l_sc[...] = jnp.zeros_like(l_sc)
        acc_sc[...] = jnp.zeros_like(acc_sc)

    q = q_ref[0]                                            # (tq, Dh) bf16
    k = k_ref[0]                                            # (tk, Dh) bf16
    v = v_ref[0]                                            # (tk, Dh) bf16
    tq, tk = q.shape[0], k.shape[0]

    s = jax.lax.dot_general(q, k, (((1,), (1,)), ((), ())),
                            preferred_element_type=jnp.float32) * scale   # (tq, tk)
    rows = qi * tq + jax.lax.broadcasted_iota(jnp.int32, (tq, tk), 0)
    cols = ki * tk + jax.lax.broadcasted_iota(jnp.int32, (tq, tk), 1)
    s = jnp.where(rows >= cols, s + pb_ref[0], NEG_INF)     # causal + key-padding bias

    m_prev = m_sc[...]
    m_new = jnp.maximum(m_prev, jnp.max(s, axis=-1, keepdims=True))
    alpha = jnp.exp(m_prev - m_new)
    p = jnp.exp(s - m_new)                                  # unnormalized probabilities
    l_sc[...] = alpha * l_sc[...] + jnp.sum(p, axis=-1, keepdims=True)
    acc_sc[...] = alpha * acc_sc[...] + jnp.dot(p.astype(jnp.bfloat16), v,
                                                preferred_element_type=jnp.float32)
    m_sc[...] = m_new

    @pl.when(ki == nk - 1)
    def _():
        ctx = (acc_sc[...] * pl.reciprocal(l_sc[...], approx=True)).astype(jnp.bfloat16)
        oacc_sc[...] += jnp.dot(ctx, wo_ref[...], preferred_element_type=jnp.float32)

    @pl.when(jnp.logical_and(h == nh - 1, ki == nk - 1))
    def _():
        o_ref[0] = oacc_sc[...].astype(o_ref.dtype)


def flash_attention(feats, q, k, v, pad_bias, wo_t, num_heads, head_dim):
    B, T, D = q.shape
    tq = _pick_tile(T, (256, 128))
    tk = _pick_tile(T, (512, 256, 128))
    kernel = partial(_flash_attn_kernel, scale=float(head_dim) ** -0.5)
    return pl.pallas_call(
        kernel,
        out_shape=jax.ShapeDtypeStruct((B, T, D), jnp.bfloat16),
        grid=(B, T // tq, num_heads, T // tk),
        in_specs=[
            pl.BlockSpec((1, tq, D), lambda b, qi, h, ki: (b, qi, 0)),          # residual
            pl.BlockSpec((1, tq, head_dim), lambda b, qi, h, ki: (b, qi, h)),   # q head slice
            pl.BlockSpec((1, tk, head_dim), lambda b, qi, h, ki: (b, ki, h)),   # k head slice
            pl.BlockSpec((1, tk, head_dim), lambda b, qi, h, ki: (b, ki, h)),   # v head slice
            pl.BlockSpec((1, 1, tk), lambda b, qi, h, ki: (b, 0, ki)),          # pad bias
            pl.BlockSpec((head_dim, D), lambda b, qi, h, ki: (h, 0)),           # wo rows of h
        ],
        out_specs=pl.BlockSpec((1, tq, D), lambda b, qi, h, ki: (b, qi, 0)),
        scratch_shapes=[
            pltpu.VMEM((tq, 1), jnp.float32),           # m
            pltpu.VMEM((tq, 1), jnp.float32),           # l
            pltpu.VMEM((tq, head_dim), jnp.float32),    # PV accumulator
            pltpu.VMEM((tq, D), jnp.float32),           # output accumulator (+residual)
        ],
        compiler_params=_params(("parallel", "parallel", "arbitrary", "arbitrary")),
    )(feats, q, k, v, pad_bias, wo_t)


# ----------------------------------------------------------------------------
# Kernel 3: SwiGLU MLP, tiled over rows and the intermediate dim
#   grid=(B, rows, I//ti); accumulator scratch preloaded with the residual; normalized
#   input cached in a bf16 scratch (computed once per row tile).
# ----------------------------------------------------------------------------
def _mlp_kernel(h_ref, g2_ref, wg_ref, wu_ref, wd_ref, o_ref, xn_sc, acc_sc):
    k = pl.program_id(2)

    @pl.when(k == 0)
    def _():
        h = h_ref[0].astype(jnp.float32)
        var = jnp.mean(h * h, axis=-1, keepdims=True)
        xn_sc[...] = (h * jax.lax.rsqrt(var + EPS) * g2_ref[...]).astype(jnp.bfloat16)
        acc_sc[...] = h                                    # residual pre-loaded

    xn = xn_sc[...]
    gate = jnp.dot(xn, wg_ref[...], preferred_element_type=jnp.float32)
    up = jnp.dot(xn, wu_ref[...], preferred_element_type=jnp.float32)
    act = (gate * jax.nn.sigmoid(gate) * up).astype(jnp.bfloat16)    # SiLU(gate) * up, f32
    acc_sc[...] += jnp.dot(act, wd_ref[...], preferred_element_type=jnp.float32)

    @pl.when(k == pl.num_programs(2) - 1)
    def _():
        o_ref[0] = acc_sc[...].astype(o_ref.dtype)


def mlp_block(h, p):
    B, T, D = h.shape
    I = p["wg_t"].shape[1]
    cap = _vmem_cap_bytes()
    ti_prefs = (1024, 512, 256, 128) if cap <= 64 * 1024 * 1024 else (2048, 1024, 512, 256, 128)
    ti = _pick_tile(I, ti_prefs)
    tr = _pick_tile(T, (256, 128))
    return pl.pallas_call(
        _mlp_kernel,
        out_shape=jax.ShapeDtypeStruct((B, T, D), jnp.bfloat16),
        grid=(B, T // tr, I // ti),
        in_specs=[
            pl.BlockSpec((1, tr, D), lambda b, r, k: (b, r, 0)),
            _const_spec((1, D), lambda b, r, k: (0, 0)),
            pl.BlockSpec((D, ti), lambda b, r, k: (0, k)),
            pl.BlockSpec((D, ti), lambda b, r, k: (0, k)),
            pl.BlockSpec((ti, D), lambda b, r, k: (k, 0)),
        ],
        out_specs=pl.BlockSpec((1, tr, D), lambda b, r, k: (b, r, 0)),
        scratch_shapes=[pltpu.VMEM((tr, D), jnp.bfloat16),
                        pltpu.VMEM((tr, D), jnp.float32)],
        compiler_params=_params(("parallel", "parallel", "arbitrary")),
    )(h, p["g2"], p["wg_t"], p["wu_t"], p["wd_t"])


# ----------------------------------------------------------------------------
# Kernel 4: fused lm_head matmul + cross-entropy (ignore_index = -100)
#   grid=(rows, vocab-chunks); online logsumexp + picked-logit accumulator; (N,V) logits
#   never touch HBM.  Rows/vocab padded to tile multiples (padded rows ignored, padded
#   vocab columns masked to NEG_INF).
# ----------------------------------------------------------------------------
def _lmhead_ce_kernel(x_ref, w_ref, lab_ref, loss_ref, valid_ref,
                      m_sc, l_sc, pick_sc, *, tv, v_total, mask_cols):
    j = pl.program_id(1)

    @pl.when(j == 0)
    def _():
        m_sc[...] = jnp.full_like(m_sc, -jnp.inf)
        l_sc[...] = jnp.zeros_like(l_sc)
        pick_sc[...] = jnp.zeros_like(pick_sc)

    logits = jnp.dot(x_ref[...], w_ref[...], preferred_element_type=jnp.float32)  # (tm, tv)
    labels = lab_ref[...]                                                          # (tm, 1)

    cols = j * tv + jax.lax.broadcasted_iota(jnp.int32, logits.shape, 1)
    if mask_cols:
        logits = jnp.where(cols < v_total, logits, NEG_INF)

    pick_sc[...] += jnp.sum(jnp.where(cols == labels, logits, 0.0),
                            axis=-1, keepdims=True)

    m_new = jnp.maximum(m_sc[...], jnp.max(logits, axis=-1, keepdims=True))
    l_sc[...] = (l_sc[...] * jnp.exp(m_sc[...] - m_new)
                 + jnp.sum(jnp.exp(logits - m_new), axis=-1, keepdims=True))
    m_sc[...] = m_new

    @pl.when(j == pl.num_programs(1) - 1)
    def _():
        valid = (labels != IGNORE_INDEX).astype(jnp.float32)
        lse = m_sc[...] + jnp.log(l_sc[...])
        loss_ref[...] = (lse - pick_sc[...]) * valid
        valid_ref[...] = valid


def lmhead_cross_entropy(x, w_t, labels):
    N, D = x.shape
    V = w_t.shape[1]
    cap = _vmem_cap_bytes()

    # Row tile sized per generation FLOP/byte target (~240 v5e / ~650 v6e / ~310 v7x).
    tm_prefs = (512, 256, 128) if cap <= 64 * 1024 * 1024 else (1024, 512, 256, 128)
    tm = next((t for t in tm_prefs if t <= N), None)
    if tm is None:
        tm = _round_up(max(N, 8), 8)
    N_pad = _round_up(N, tm)
    if N_pad != N:
        x = jnp.pad(x, ((0, N_pad - N), (0, 0)))
        labels = jnp.pad(labels, (0, N_pad - N), constant_values=IGNORE_INDEX)

    tv = None
    for t in (2048, 1024, 512, 256):
        if t <= V and V % t == 0:
            tv = t
            break
    if tv is None:
        tv = 1024 if V >= 1024 else _round_up(V, 128)
    V_pad = _round_up(V, tv)
    if V_pad != V:
        w_t = jnp.pad(w_t, ((0, 0), (0, V_pad - V)))

    labels2 = labels.reshape(N_pad, 1).astype(jnp.int32)
    kernel = partial(_lmhead_ce_kernel, tv=tv, v_total=V, mask_cols=(V_pad != V))
    loss, valid = pl.pallas_call(
        kernel,
        out_shape=(jax.ShapeDtypeStruct((N_pad, 1), jnp.float32),
                   jax.ShapeDtypeStruct((N_pad, 1), jnp.float32)),
        grid=(N_pad // tm, V_pad // tv),
        in_specs=[pl.BlockSpec((tm, D), lambda i, j: (i, 0)),
                  pl.BlockSpec((D, tv), lambda i, j: (0, j)),
                  pl.BlockSpec((tm, 1), lambda i, j: (i, 0))],
        out_specs=(pl.BlockSpec((tm, 1), lambda i, j: (i, 0)),
                   pl.BlockSpec((tm, 1), lambda i, j: (i, 0))),
        scratch_shapes=[pltpu.VMEM((tm, 1), jnp.float32),
                        pltpu.VMEM((tm, 1), jnp.float32),
                        pltpu.VMEM((tm, 1), jnp.float32)],
        compiler_params=_params(("parallel", "arbitrary")),
    )(x, w_t, labels2)
    cnt = jnp.sum(valid)
    return jnp.sum(loss) / jnp.maximum(cnt, 1.0)   # guard: all-ignored shard -> 0, not NaN


# ----------------------------------------------------------------------------
# Plain-JAX glue: RoPE tables (sign folded into sin, tiled across heads), pad-bias row
# ----------------------------------------------------------------------------
def rope_tables(positions, head_dim, num_heads, theta=10000.0):
    pos = np.asarray(positions, dtype=np.float32)
    inv_freq = 1.0 / (theta ** (np.arange(0, head_dim, 2, dtype=np.float32) / head_dim))
    freqs = pos[:, None] * inv_freq[None, :]
    emb = np.concatenate([freqs, freqs], axis=-1)            # (T, head_dim)
    cos = np.cos(emb)
    sin = np.sin(emb)
    half = head_dim // 2
    sign = np.concatenate([-np.ones(half, np.float32), np.ones(half, np.float32)])
    sin = sin * sign[None, :]
    cos = np.tile(cos, (1, num_heads))                        # (T, D)
    sin = np.tile(sin, (1, num_heads))
    return jnp.asarray(cos, jnp.float32), jnp.asarray(sin, jnp.float32)


def build_pad_bias(pad_mask):
    """pad_mask: (B, T) of {0,1} -> additive key-padding bias row (B, 1, T)."""
    return jnp.where(pad_mask[:, None, :] > 0, 0.0, NEG_INF).astype(jnp.float32)


# ----------------------------------------------------------------------------
# Parameters (deterministic synthetic init; matmul weights stored in bf16, pre-transposed;
# q/k/v fused into one (D, 3D) weight)
# ----------------------------------------------------------------------------
def init_params(key, D, I, V):
    keys = jax.random.split(key, 16)
    sc = 0.02

    def w(k, shape):
        return (jax.random.normal(k, shape, jnp.float32) * sc).astype(jnp.bfloat16)

    params = {
        "embed": jax.random.normal(keys[0], (V, D), jnp.float32) * sc,
        "lm_head_t": w(keys[1], (D, V)),
    }
    for idx, name in enumerate(("mtp1", "mtp2")):
        base = 2 + idx * 6
        params[name] = {
            "gl": jnp.ones((1, D), jnp.float32),             # mtp_k_local_RMSNorm.weight
            "wp_t": w(keys[base + 0], (D, D)),               # mtp_k_proj.weight (transposed)
            "bp": jnp.zeros((1, D), jnp.float32),            # mtp_k_proj.bias
            "g1": jnp.ones((1, D), jnp.float32),             # input_layernorm
            "wqkv_t": w(keys[base + 1], (D, 3 * D)),         # fused q/k/v proj (transposed)
            "wo_t": w(keys[base + 2], (D, D)),               # o_proj (transposed)
            "g2": jnp.ones((1, D), jnp.float32),             # post_attention_layernorm
            "wg_t": w(keys[base + 3], (D, I)),
            "wu_t": w(keys[base + 4], (D, I)),
            "wd_t": w(keys[base + 5], (I, D)),
        }
    return params


# ----------------------------------------------------------------------------
# One MTP stage: proj + decoder layer (flash attention + SwiGLU MLP)
# ----------------------------------------------------------------------------
def mtp_stage(prev_hidden, p, pad_mask, positions, num_heads, head_dim):
    B, T0, D = prev_hidden.shape
    # Pad the sequence to a tileable length so row blocks never fall back to a huge
    # un-tiled extent (padded keys are masked; padded query rows are sliced off).
    granule = 128 if T0 >= 128 else _round_up(T0, 8)
    T = _round_up(T0, granule)
    positions = np.asarray(positions)
    if T != T0:
        prev_hidden = jnp.pad(prev_hidden, ((0, 0), (0, T - T0), (0, 0)))
        pad_mask = jnp.pad(pad_mask, ((0, 0), (0, T - T0)))
        positions = np.concatenate(
            [positions, np.arange(T - T0) + int(np.max(positions)) + 1])

    cos, sin = rope_tables(positions, head_dim, num_heads)
    pad_bias = build_pad_bias(pad_mask)

    feats, q, k, v = proj_qkv(prev_hidden, cos, sin, p, head_dim)
    h1 = flash_attention(feats, q, k, v, pad_bias, p["wo_t"], num_heads, head_dim)
    out = mlp_block(h1, p)
    return out[:, :T0, :]


# ----------------------------------------------------------------------------
# CustomModel.forward
# ----------------------------------------------------------------------------
def custom_model_forward(params, input_ids, attention_mask, labels, *, num_heads, head_dim):
    B, T = input_ids.shape
    D = params["embed"].shape[1]
    positions = np.arange(T)

    # TODO(synk): frozen pretrained LLM body approximated by deterministic embedding lookup.
    hidden = jnp.take(params["embed"], input_ids, axis=0).astype(jnp.bfloat16)   # (B, T, D)

    # ---------------- MTP-1 ----------------
    out1 = mtp_stage(hidden[:, :-1, :], params["mtp1"],
                     attention_mask[:, 1:], positions[:-1], num_heads, head_dim)
    # ---------------- MTP-2 ----------------
    out2 = mtp_stage(out1[:, :-1, :], params["mtp2"],
                     attention_mask[:, 2:], positions[:-2], num_heads, head_dim)

    # ---------------- fused lm_head + cross-entropy ----------------
    # Only the logits rows that actually feed the loss (logits_k[:, :-1]) are computed.
    l1 = lmhead_cross_entropy(out1[:, :-1, :].reshape(-1, D), params["lm_head_t"],
                              labels[:, 2:].reshape(-1))
    l2 = lmhead_cross_entropy(out2[:, :-1, :].reshape(-1, D), params["lm_head_t"],
                              labels[:, 3:].reshape(-1))
    return [l1 + l2]


if __name__ == "__main__":
    # Small shapes consistent with the module (module hardcodes hidden=2048; scaled down).
    B, T = 2, 16
    NUM_HEADS, HEAD_DIM = 2, 128
    D = NUM_HEADS * HEAD_DIM                 # 256
    INTERMEDIATE = 1024
    VOCAB = 3000                             # non-divisible: exercises CE vocab pad + mask

    key = jax.random.PRNGKey(0)
    kp, ki, kl = jax.random.split(key, 3)
    params = init_params(kp, D, INTERMEDIATE, VOCAB)

    input_ids = jax.random.randint(ki, (B, T), 0, VOCAB, dtype=jnp.int32)
    attention_mask = jnp.ones((B, T), dtype=jnp.int32).at[1, T - 2:].set(0)   # some padding
    labels = jax.random.randint(kl, (B, T), 0, VOCAB, dtype=jnp.int32)
    labels = labels.at[1, T - 2:].set(IGNORE_INDEX)                           # exercise ignore_index

    out = custom_model_forward(params, input_ids, attention_mask, labels,
                               num_heads=NUM_HEADS, head_dim=HEAD_DIM)
    jax.block_until_ready(out)
    print("KERNEL_OK")
</pallas_src>

<mosaic_0001>
module attributes {stable_mosaic.version = 11 : i64} {
  func.func @_probe_kernel(%arg0: i32, %arg1: memref<8x128xf32, #tpu.memory_space<vmem>>, %arg2: memref<8x128xf32, #tpu.memory_space<vmem>>) attributes {dimension_semantics = [#tpu.dimension_semantics<arbitrary>], iteration_bounds = array<i64: 2>, scalar_prefetch = 0 : i64, scratch_operands = 0 : i64, tpu.core_type = #tpu.core_type<tc>, window_params = [{pipeline_mode = #tpu.pipeline_mode<synchronous>, transform_indices = @transform_0, window_bounds = array<i64: 8, 128>}, {pipeline_mode = #tpu.pipeline_mode<synchronous>, transform_indices = @transform_1, window_bounds = array<i64: 8, 128>}]} {
    %c0 = arith.constant 0 : index
    %c0_0 = arith.constant 0 : index
    %0 = vector.load %arg1[%c0, %c0_0] : memref<8x128xf32, #tpu.memory_space<vmem>>, vector<8x128xf32>
    %c0_1 = arith.constant 0 : index
    %c0_2 = arith.constant 0 : index
    %1 = vector.load %arg2[%c0_1, %c0_2] : memref<8x128xf32, #tpu.memory_space<vmem>>, vector<8x128xf32>
    tpu.vector_store %arg2[%c0_1, %c0_2], %0 {strides = array<i32>} : memref<8x128xf32, #tpu.memory_space<vmem>>, vector<8x128xf32>,
    return
  }
  func.func @transform_0(%arg0: i32) -> (i32, i32) {
    %c0_i32 = arith.constant 0 : i32
    %c0_i32_0 = arith.constant 0 : i32
    %c0_i32_1 = arith.constant 0 : i32
    return %c0_i32, %c0_i32_0 : i32, i32
  }
  func.func @transform_1(%arg0: i32) -> (i32, i32) {
    %c0_i32 = arith.constant 0 : i32
    %c0_i32_0 = arith.constant 0 : i32
    %c0_i32_1 = arith.constant 0 : i32
    return %c0_i32, %c0_i32_0 : i32, i32
  }
}

module attributes {stable_mosaic.version = 11 : i64} {
  func.func @_proj_qkv_kernel(%arg0: i32, %arg1: i32, %arg2: memref<1x16x256xbf16, #tpu.memory_space<vmem>>, %arg3: memref<16x256xf32, #tpu.memory_space<vmem>>, %arg4: memref<16x256xf32, #tpu.memory_space<vmem>>, %arg5: memref<1x256xf32, #tpu.memory_space<vmem>>, %arg6: memref<256x256xbf16, #tpu.memory_space<vmem>>, %arg7: memref<1x256xf32, #tpu.memory_space<vmem>>, %arg8: memref<1x256xf32, #tpu.memory_space<vmem>>, %arg9: memref<256x768xbf16, #tpu.memory_space<vmem>>, %arg10: memref<1x16x256xbf16, #tpu.memory_space<vmem>>, %arg11: memref<1x16x256xbf16, #tpu.memory_space<vmem>>, %arg12: memref<1x16x256xbf16, #tpu.memory_space<vmem>>, %arg13: memref<1x16x256xbf16, #tpu.memory_space<vmem>>) attributes {dimension_semantics = [#tpu.dimension_semantics<parallel>, #tpu.dimension_semantics<parallel>], iteration_bounds = array<i64: 2, 1>, scalar_prefetch = 0 : i64, scratch_operands = 0 : i64, tpu.core_type = #tpu.core_type<tc>, window_params = [{transform_indices = @transform_0, window_bounds = array<i64: 1, 16, 256>}, {transform_indices = @transform_1, window_bounds = array<i64: 16, 256>}, {transform_indices = @transform_2, window_bounds = array<i64: 16, 256>}, {pipeline_mode = #tpu.pipeline_mode<synchronous>, transform_indices = @transform_3, window_bounds = array<i64: 1, 256>}, {pipeline_mode = #tpu.pipeline_mode<synchronous>, transform_indices = @transform_4, window_bounds = array<i64: 256, 256>}, {pipeline_mode = #tpu.pipeline_mode<synchronous>, transform_indices = @transform_5, window_bounds = array<i64: 1, 256>}, {pipeline_mode = #tpu.pipeline_mode<synchronous>, transform_indices = @transform_6, window_bounds = array<i64: 1, 256>}, {pipeline_mode = #tpu.pipeline_mode<synchronous>, transform_indices = @transform_7, window_bounds = array<i64: 256, 768>}, {transform_indices = @transform_8, window_bounds = array<i64: 1, 16, 256>}, {transform_indices = @transform_9, window_bounds = array<i64: 1, 16, 256>}, {transform_indices = @transform_10, window_bounds = array<i64: 1, 16, 256>}, {transform_indices = @transform_11, window_bounds = array<i64: 1, 16, 256>}]} {
    %c0 = arith.constant 0 : index
    %c0_0 = arith.constant 0 : index
    %c0_1 = arith.constant 0 : index
    %0 = vector.load %arg2[%c0, %c0_0, %c0_1] : memref<1x16x256xbf16, #tpu.memory_space<vmem>>, vector<1x16x256xbf16>
    %1 = vector.shape_cast %0 : vector<1x16x256xbf16> to vector<16x256xbf16>
    %2 = arith.extf %1 : vector<16x256xbf16> to vector<16x256xf32>
    %3 = arith.mulf %2, %2 : vector<16x256xf32>
    %cst = arith.constant dense<0.000000e+00> : vector<16xf32>
    %4 = vector.multi_reduction <add>, %3, %cst [1] : vector<16x256xf32> to vector<16xf32>
    %5 = vector.shape_cast %4 : vector<16xf32> to vector<16x1xf32>
    %cst_2 = arith.constant 2.560000e+02 : f32
    %6 = vector.broadcast %cst_2 : f32 to vector<16x1xf32>
    %7 = arith.divf %5, %6 : vector<16x1xf32>
    %cst_3 = arith.constant 9.99999997E-7 : f32
    %8 = vector.broadcast %cst_3 : f32 to vector<16x1xf32>
    %9 = arith.addf %7, %8 : vector<16x1xf32>
    %10 = math.rsqrt %9 : vector<16x1xf32>
    %11 = vector.broadcast %10 : vector<16x1xf32> to vector<16x256xf32>
    %12 = arith.mulf %2, %11 : vector<16x256xf32>
    %c0_4 = arith.constant 0 : index
    %c0_5 = arith.constant 0 : index
    %13 = vector.load %arg5[%c0_4, %c0_5] : memref<1x256xf32, #tpu.memory_space<vmem>>, vector<1x256xf32>
    %14 = vector.broadcast %13 : vector<1x256xf32> to vector<16x256xf32>
    %15 = arith.mulf %12, %14 : vector<16x256xf32>
    %16 = arith.truncf %15 : vector<16x256xf32> to vector<16x256xbf16>
    %c0_6 = arith.constant 0 : index
    %c0_7 = arith.constant 0 : index
    %17 = vector.load %arg6[%c0_6, %c0_7] : memref<256x256xbf16, #tpu.memory_space<vmem>>, vector<256x256xbf16>
    %cst_8 = arith.constant dense<0.000000e+00> : vector<16x256xf32>
    %18 = tpu.matmul %16, %17, %cst_8 {dimension_numbers = #tpu.dot_dimension_numbers<[1], [0], [0], [1], [0, 0, 1, 1], [], []>} : vector<16x256xbf16>, vector<256x256xbf16>, vector<16x256xf32> -> vector<16x256xf32>
    %c0_9 = arith.constant 0 : index
    %c0_10 = arith.constant 0 : index
    %19 = vector.load %arg7[%c0_9, %c0_10] : memref<1x256xf32, #tpu.memory_space<vmem>>, vector<1x256xf32>
    %20 = vector.broadcast %19 : vector<1x256xf32> to vector<16x256xf32>
    %21 = arith.addf %18, %20 : vector<16x256xf32>
    %22 = arith.truncf %21 : vector<16x256xf32> to vector<16x256xbf16>
    %c0_11 = arith.constant 0 : index
    %c0_12 = arith.constant 0 : index
    %c0_13 = arith.constant 0 : index
    %23 = vector.load %arg10[%c0_11, %c0_12, %c0_13] : memref<1x16x256xbf16, #tpu.memory_space<vmem>>, vector<1x16x256xbf16>
    %24 = vector.shape_cast %23 : vector<1x16x256xbf16> to vector<16x256xbf16>
    %25 = vector.shape_cast %22 : vector<16x256xbf16> to vector<1x16x256xbf16>
    tpu.vector_store %arg10[%c0_11, %c0_12, %c0_13], %25 {strides = array<i32>} : memref<1x16x256xbf16, #tpu.memory_space<vmem>>, vector<1x16x256xbf16>,
    %26 = arith.mulf %21, %21 : vector<16x256xf32>
    %cst_14 = arith.constant dense<0.000000e+00> : vector<16xf32>
    %27 = vector.multi_reduction <add>, %26, %cst_14 [1] : vector<16x256xf32> to vector<16xf32>
    %28 = vector.shape_cast %27 : vector<16xf32> to vector<16x1xf32>
    %cst_15 = arith.constant 2.560000e+02 : f32
    %29 = vector.broadcast %cst_15 : f32 to vector<16x1xf32>
    %30 = arith.divf %28, %29 : vector<16x1xf32>
    %cst_16 = arith.constant 9.99999997E-7 : f32
    %31 = vector.broadcast %cst_16 : f32 to vector<16x1xf32>
    %32 = arith.addf %30, %31 : vector<16x1xf32>
    %33 = math.rsqrt %32 : vector<16x1xf32>
    %34 = vector.broadcast %33 : vector<16x1xf32> to vector<16x256xf32>
    %35 = arith.mulf %21, %34 : vector<16x256xf32>
    %c0_17 = arith.constant 0 : index
    %c0_18 = arith.constant 0 : index
    %36 = vector.load %arg8[%c0_17, %c0_18] : memref<1x256xf32, #tpu.memory_space<vmem>>, vector<1x256xf32>
    %37 = vector.broadcast %36 : vector<1x256xf32> to vector<16x256xf32>
    %38 = arith.mulf %35, %37 : vector<16x256xf32>
    %39 = arith.truncf %38 : vector<16x256xf32> to vector<16x256xbf16>
    %c0_19 = arith.constant 0 : index
    %c0_20 = arith.constant 0 : index
    %40 = vector.load %arg9[%c0_19, %c0_20] : memref<256x768xbf16, #tpu.memory_space<vmem>>, vector<256x768xbf16>
    %cst_21 = arith.constant dense<0.000000e+00> : vector<16x768xf32>
    %41 = tpu.matmul %39, %40, %cst_21 {dimension_numbers = #tpu.dot_dimension_numbers<[1], [0], [0], [1], [0, 0, 1, 1], [], []>} : vector<16x256xbf16>, vector<256x768xbf16>, vector<16x768xf32> -> vector<16x768xf32>
    %c0_22 = arith.constant 0 : index
    %c0_23 = arith.constant 0 : index
    %42 = vector.load %arg3[%c0_22, %c0_23] : memref<16x256xf32, #tpu.memory_space<vmem>>, vector<16x256xf32>
    %c0_24 = arith.constant 0 : index
    %c0_25 = arith.constant 0 : index
    %43 = vector.load %arg4[%c0_24, %c0_25] : memref<16x256xf32, #tpu.memory_space<vmem>>, vector<16x256xf32>
    %44 = tpu.iota {dimensions = array<i32: 1>} : vector<16x256xi32>
    %c128_i32 = arith.constant 128 : i32
    %c0_i32 = arith.constant 0 : i32
    %45 = arith.cmpi eq, %c128_i32, %c0_i32 : i32
    %c1_i32 = arith.constant 1 : i32
    %46 = arith.select %45, %c1_i32, %c128_i32 : i32
    %47 = vector.broadcast %46 : i32 to vector<16x256xi32>
    %48 = arith.remsi %44, %47 : vector<16x256xi32>
    %c0_i32_26 = arith.constant 0 : i32
    %49 = vector.broadcast %c0_i32_26 : i32 to vector<16x256xi32>
    %50 = arith.cmpi ne, %48, %49 : vector<16x256xi32>
    %c0_i32_27 = arith.constant 0 : i32
    %51 = vector.broadcast %c0_i32_27 : i32 to vector<16x256xi32>
    %52 = arith.cmpi slt, %48, %51 : vector<16x256xi32>
    %c0_i32_28 = arith.constant 0 : i32
    %53 = arith.cmpi slt, %46, %c0_i32_28 : i32
    %54 = vector.broadcast %53 : i1 to vector<16x256xi1>
    %55 = vector.broadcast %54 : vector<16x256xi1> to vector<16x256xi1>
    %56 = arith.xori %52, %55 : vector<16x256xi1>
    %57 = arith.andi %56, %50 : vector<16x256xi1>
    %58 = vector.broadcast %46 : i32 to vector<16x256xi32>
    %59 = arith.addi %48, %58 : vector<16x256xi32>
    %60 = arith.select %57, %59, %48 : vector<16x256xi1>, vector<16x256xi32>
    %c64_i32 = arith.constant 64 : i32
    %61 = vector.broadcast %c64_i32 : i32 to vector<16x256xi32>
    %62 = arith.cmpi sge, %60, %61 : vector<16x256xi32>
    %63 = vector.extract_strided_slice %41 {offsets = [0, 0], sizes = [16, 256], strides = [1, 1]} : vector<16x768xf32> to vector<16x256xf32>
    %c64_i32_29 = arith.constant 64 : i32
    %64 = tpu.dynamic_rotate %63 by %c64_i32_29 dim 1 : vector<16x256xf32>, i32 -> vector<16x256xf32>
    %c192_i32 = arith.constant 192 : i32
    %65 = tpu.dynamic_rotate %63 by %c192_i32 dim 1 : vector<16x256xf32>, i32 -> vector<16x256xf32>
    %66 = arith.select %62, %64, %65 : vector<16x256xi1>, vector<16x256xf32>
    %67 = arith.mulf %63, %42 : vector<16x256xf32>
    %68 = arith.mulf %66, %43 : vector<16x256xf32>
    %69 = arith.addf %67, %68 : vector<16x256xf32>
    %70 = arith.truncf %69 : vector<16x256xf32> to vector<16x256xbf16>
    %c0_30 = arith.constant 0 : index
    %c0_31 = arith.constant 0 : index
    %c0_32 = arith.constant 0 : index
    %71 = vector.load %arg11[%c0_30, %c0_31, %c0_32] : memref<1x16x256xbf16, #tpu.memory_space<vmem>>, vector<1x16x256xbf16>
    %72 = vector.shape_cast %71 : vector<1x16x256xbf16> to vector<16x256xbf16>
    %73 = vector.shape_cast %70 : vector<16x256xbf16> to vector<1x16x256xbf16>
    tpu.vector_store %arg11[%c0_30, %c0_31, %c0_32], %73 {strides = array<i32>} : memref<1x16x256xbf16, #tpu.memory_space<vmem>>, vector<1x16x256xbf16>,
    %74 = vector.extract_strided_slice %41 {offsets = [0, 256], sizes = [16, 256], strides = [1, 1]} : vector<16x768xf32> to vector<16x256xf32>
    %c64_i32_33 = arith.constant 64 : i32
    %75 = tpu.dynamic_rotate %74 by %c64_i32_33 dim 1 : vector<16x256xf32>, i32 -> vector<16x256xf32>
    %c192_i32_34 = arith.constant 192 : i32
    %76 = tpu.dynamic_rotate %74 by %c192_i32_34 dim 1 : vector<16x256xf32>, i32 -> vector<16x256xf32>
    %77 = arith.select %62, %75, %76 : vector<16x256xi1>, vector<16x256xf32>
    %78 = arith.mulf %74, %42 : vector<16x256xf32>
    %79 = arith.mulf %77, %43 : vector<16x256xf32>
    %80 = arith.addf %78, %79 : vector<16x256xf32>
    %81 = arith.truncf %80 : vector<16x256xf32> to vector<16x256xbf16>
    %c0_35 = arith.constant 0 : index
    %c0_36 = arith.constant 0 : index
    %c0_37 = arith.constant 0 : index
    %82 = vector.load %arg12[%c0_35, %c0_36, %c0_37] : memref<1x16x256xbf16, #tpu.memory_space<vmem>>, vector<1x16x256xbf16>
    %83 = vector.shape_cast %82 : vector<1x16x256xbf16> to vector<16x256xbf16>
    %84 = vector.shape_cast %81 : vector<16x256xbf16> to vector<1x16x256xbf16>
    tpu.vector_store %arg12[%c0_35, %c0_36, %c0_37], %84 {strides = array<i32>} : memref<1x16x256xbf16, #tpu.memory_space<vmem>>, vector<1x16x256xbf16>,
    %85 = vector.extract_strided_slice %41 {offsets = [0, 512], sizes = [16, 256], strides = [1, 1]} : vector<16x768xf32> to vector<16x256xf32>
    %86 = arith.truncf %85 : vector<16x256xf32> to vector<16x256xbf16>
    %c0_38 = arith.constant 0 : index
    %c0_39 = arith.constant 0 : index
    %c0_40 = arith.constant 0 : index
    %87 = vector.load %arg13[%c0_38, %c0_39, %c0_40] : memref<1x16x256xbf16, #tpu.memory_space<vmem>>, vector<1x16x256xbf16>
    %88 = vector.shape_cast %87 : vector<1x16x256xbf16> to vector<16x256xbf16>
    %89 = vector.shape_cast %86 : vector<16x256xbf16> to vector<1x16x256xbf16>
    tpu.vector_store %arg13[%c0_38, %c0_39, %c0_40], %89 {strides = array<i32>} : memref<1x16x256xbf16, #tpu.memory_space<vmem>>, vector<1x16x256xbf16>,
    return
  }
  func.func @transform_0(%arg0: i32, %arg1: i32) -> (i32, i32, i32) {
    %c0_i32 = arith.constant 0 : i32
    %c0_i32_0 = arith.constant 0 : i32
    return %arg0, %arg1, %c0_i32 : i32, i32, i32
  }
  func.func @transform_1(%arg0: i32, %arg1: i32) -> (i32, i32) {
    %c0_i32 = arith.constant 0 : i32
    %c0_i32_0 = arith.constant 0 : i32
    return %arg1, %c0_i32 : i32, i32
  }
  func.func @transform_2(%arg0: i32, %arg1: i32) -> (i32, i32) {
    %c0_i32 = arith.constant 0 : i32
    %c0_i32_0 = arith.constant 0 : i32
    return %arg1, %c0_i32 : i32, i32
  }
  func.func @transform_3(%arg0: i32, %arg1: i32) -> (i32, i32) {
    %c0_i32 = arith.constant 0 : i32
    %c0_i32_0 = arith.constant 0 : i32
    %c0_i32_1 = arith.constant 0 : i32
    return %c0_i32, %c0_i32_0 : i32, i32
  }
  func.func @transform_4(%arg0: i32, %arg1: i32) -> (i32, i32) {
    %c0_i32 = arith.constant 0 : i32
    %c0_i32_0 = arith.constant 0 : i32
    %c0_i32_1 = arith.constant 0 : i32
    return %c0_i32, %c0_i32_0 : i32, i32
  }
  func.func @transform_5(%arg0: i32, %arg1: i32) -> (i32, i32) {
    %c0_i32 = arith.constant 0 : i32
    %c0_i32_0 = arith.constant 0 : i32
    %c0_i32_1 = arith.constant 0 : i32
    return %c0_i32, %c0_i32_0 : i32, i32
  }
  func.func @transform_6(%arg0: i32, %arg1: i32) -> (i32, i32) {
    %c0_i32 = arith.constant 0 : i32
    %c0_i32_0 = arith.constant 0 : i32
    %c0_i32_1 = arith.constant 0 : i32
    return %c0_i32, %c0_i32_0 : i32, i32
  }
  func.func @transform_7(%arg0: i32, %arg1: i32) -> (i32, i32) {
    %c0_i32 = arith.constant 0 : i32
    %c0_i32_0 = arith.constant 0 : i32
    %c0_i32_1 = arith.constant 0 : i32
    return %c0_i32, %c0_i32_0 : i32, i32
  }
  func.func @transform_8(%arg0: i32, %arg1: i32) -> (i32, i32, i32) {
    %c0_i32 = arith.constant 0 : i32
    %c0_i32_0 = arith.constant 0 : i32
    return %arg0, %arg1, %c0_i32 : i32, i32, i32
  }
  func.func @transform_9(%arg0: i32, %arg1: i32) -> (i32, i32, i32) {
    %c0_i32 = arith.constant 0 : i32
    %c0_i32_0 = arith.constant 0 : i32
    return %arg0, %arg1, %c0_i32 : i32, i32, i32
  }
  func.func @transform_10(%arg0: i32, %arg1: i32) -> (i32, i32, i32) {
    %c0_i32 = arith.constant 0 : i32
    %c0_i32_0 = arith.constant 0 : i32
    return %arg0, %arg1, %c0_i32 : i32, i32, i32
  }
  func.func @transform_11(%arg0: i32, %arg1: i32) -> (i32, i32, i32) {
    %c0_i32 = arith.constant 0 : i32
    %c0_i32_0 = arith.constant 0 : i32
    return %arg0, %arg1, %c0_i32 : i32, i32, i32
  }
}

</mosaic_0001>

<bundles_post_ra>
// kernel: tpu_custom_call.1
= control target key start
LH: loop header
LB: loop body
LE: loop exit
PB: predicated region body
PF: predicated region fallthrough
CT: control target
= control target key end

     0   :  { %6 = vsyncpa [#allocation3], 0  ;;  %s340_s0 = inlined_call_operand.hbm [shape: f32[8,128], index: 0, kind: input, shape index: {}]   ;;  %s341_s1 = inlined_call_operand.hbm [shape: f32[8,128], index: 1, kind: output, shape index: {}]  }
   0x1   :  { %7 = vsyncpa [#allocation4], 0  ;;  %s261_s6 = smov 0  }
   0x2 LB: > { %s144_s7 = sadd.s32 4294967295, %s247_s6   ;;  %p145_p0 = scmp.ge.s32.totalorder %s247_s6, 1  ;;  %s247_s6 = sphi %s261_s6, %s13_s6  }
   0x3   : > { %p60_p1 = scmp.lt.s32.totalorder %s247_s6, 3  ;;  %p275_p3 = scmp.eq.s32.totalorder %s144_s7, 0 }
   0x4   : > { %s249_s10 = smov [#allocation2]   ;;  %s179_s15 = scalar_lea.hbm %s340_s0, 128 }
   0x5   : > { %p269_p2 = pnand %p145_p0, %p60_p1  ;;  %s73_s11 = sshll.u32 %s249_s10, 4  ;;  %s74_s11 = int_to_ptr.vmem [resolvable:$true] %s73_s11 }
   0x6   : > { %s346_s9 = scalar_select %p275_p3, 1, 0 }
   0x7   : > { %s345_s8 = scalar_select %p269_p2, 1, 0 }
   0x8   : > { %p161_p4 = pneg %p269_p2  ;;  %p180_p6 = scmp.ne.s32.totalorder %s340_s0, %s179_s15 }
   0x9   : > { %p186_p10 = scmp.lt.u32.totalorder %s179_s15, %s340_s0 }
   0xa   : > { %p283_p5 = pnand %p275_p3, %p161_p4 }
   0xc   : > { %p181_p7 = pneg %p283_p5 }
   0xe   : > { %p182_p8 = pnand %p181_p7, %p180_p6 }
  0x10   : > { %p183_p9 = pneg %p182_p8 }
  0x12   : > { %p188_p11 = pnand %p186_p10, %p183_p9 }
  0x14   : > { %191 = shalt.err (!%p188_p11)
}
  0x15   : > { %s192_s20 = scalar_lea.vmem %s74_s11, 128  ;;  %p200_p1 = scmp.lt.s32.totalorder %s74_s11, %s74_s11 }
  0x16   : > { %p193_p12 = scmp.ne.s32.totalorder %s74_s11, %s192_s20  ;;  %p201_p4 = scmp.lt.s32.totalorder %s192_s20, %s192_s20 }
  0x18   : > { %p195_p13 = pnand %p193_p12, %p181_p7  ;;  %p202_p3 = por %p201_p4, %p200_p1 }
  0x1a   : > { %p196_p0 = pneg %p195_p13 }
  0x1c   : > { %p203_p2 = pnand %p202_p3, %p196_p0 }
  0x1e   : > { %206 = shalt.err (!%p203_p2)
}
  0x1f   : > { %164 = dma.hbm_to_vmem [thread:$0]  (!%p283_p5), %s340_s0, 128, %s74_s11, [#allocation3]  }
  0x20   : > { %p348_p6 = scmp.ne.s32.totalorder %s345_s8, 0 }
  0x21   : > { %p349_p8 = scmp.ne.s32.totalorder (!%p348_p6), %s346_s9, 0 }
  0x22   : > { %86 = sbr.rel (%p348_p6) target bundleno = 67 (0x43), region = 24 }
  0x29   : > { %238 = dma.done.wait (%p349_p8), [#allocation3], 128  }
  0x2a   : > { %240 = vsyncadd (%p349_p8), [#allocation3], 4294967168  ;;  %s250_s23 = smov [#allocation5]   ;;  %p311_p2 = scmp.eq.s32.totalorder %s144_s7, 1  ;;  %v96_v0 = vld [vmem:[#allocation2] sm:$0xff] }
  0x2b   : > { %s105_s24 = sshll.u32 %s250_s23, 4  ;;  %97 = vst [vmem:[#allocation5] sm:$0xff] %v96_v0  ;;  %s106_s24 = int_to_ptr.vmem [resolvable:$true] %s105_s24 }
  0x2c   : > { %s207_s26 = scalar_lea.vmem %s106_s24, 128  ;;  %p214_p9 = scmp.lt.s32.totalorder %s106_s24, %s106_s24 }
  0x2d   : > { %p208_p3 = scmp.ne.s32.totalorder %s106_s24, %s207_s26  ;;  %p215_p10 = scmp.lt.s32.totalorder %s207_s26, %s207_s26 }
  0x2f   : > { %p209_p5 = pnand %p208_p3, %p311_p2  ;;  %p216_p11 = por %p215_p10, %p214_p9 }
  0x31   : > { %p210_p7 = pneg %p209_p5 }
  0x33   : > { %p217_p12 = pnand %p216_p11, %p210_p7 }
  0x35   : > { %220 = shalt.err (!%p217_p12)
}
  0x36   : > { %s221_s29 = scalar_lea.hbm %s341_s1, 128 }
  0x37   : > { %p222_p13 = scmp.ne.s32.totalorder %s341_s1, %s221_s29  ;;  %p227_p4 = scmp.lt.u32.totalorder %s221_s29, %s341_s1 }
  0x39   : > { %p223_p0 = pnand %p222_p13, %p311_p2 }
  0x3b   : > { %p224_p1 = pneg %p223_p0 }
  0x3d   : > { %p229_p6 = pnand %p227_p4, %p224_p1 }
  0x3f   : > { %232 = shalt.err (!%p229_p6)
}
  0x40   : > { %158 = dma.vmem_to_hbm [thread:$0]  (%p311_p2), %s106_s24, 128, %s341_s1, [#allocation4]  }
  0x41   : > { %242 = dma.done.wait (%p311_p2), [#allocation4], 128  }
  0x42   : > { %244 = vsyncadd (%p311_p2), [#allocation4], 4294967168 }
  0x43 PF: > { %s13_s6 = sadd.s32 1, %s247_s6  }
  0x44   : > { %p10_p8 = scmp.ge.s32.totalorder %s13_s6, 4  }
  0x46   :  { %12 = sbr.rel (!%p10_p8) target bundleno = 2 (0x2), region = 53 }
  0x4d   :  { %118 = vsyncpa [#allocation3], 1 }
  0x4e   :  { %120 = vsyncpa [#allocation3 + $0x1], 1 }
  0x4f   :  { %121 = vsyncpa [#allocation4], 1 }
  0x50   :  { %123 = vsyncpa [#allocation4 + $0x1], 1 }

// kernel: tpu_custom_call.1
= control target key start
LH: loop header
LB: loop body
LE: loop exit
PB: predicated region body
PF: predicated region fallthrough
CT: control target
= control target key end

     0   :  { %s3560_s0 = inlined_call_operand.hbm [shape: bf16[2,16,256], index: 0, kind: input, shape index: {}]   ;;  %s3561_s1 = inlined_call_operand.hbm [shape: f32[16,256], index: 1, kind: input, shape index: {}]   ;;  %s3562_s2 = inlined_call_operand.hbm [shape: f32[16,256], index: 2, kind: input, shape index: {}]   ;;  %s3563_s3 = inlined_call_operand.vmem [shape: f32[1,256], index: 3, kind: input, shape index: {}]   ;;  %s3564_s4 = inlined_call_operand.hbm [shape: bf16[256,256], index: 4, kind: input, shape index: {}]   ;;  %s3565_s5 = inlined_call_operand.vmem [shape: f32[1,256], index: 5, kind: input, shape index: {}]   ;;  %s3566_s6 = inlined_call_operand.vmem [shape: f32[1,256], index: 6, kind: input, shape index: {}]   ;;  %s3567_s7 = inlined_call_operand.hbm [shape: bf16[256,768], index: 7, kind: input, shape index: {}]   ;;  %s3568_s8 = inlined_call_operand.hbm [shape: bf16[2,16,256], index: 8, kind: output, shape index: {0}]   ;;  %s3569_s9 = inlined_call_operand.hbm [shape: bf16[2,16,256], index: 9, kind: output, shape index: {1}]   ;;  %s3570_s10 = inlined_call_operand.hbm [shape: bf16[2,16,256], index: 10, kind: output, shape index: {2}]   ;;  %s3571_s11 = inlined_call_operand.hbm [shape: bf16[2,16,256], index: 11, kind: output, shape index: {3}]  }
   0x1   :  { %3589 = sst [smem:[#allocation25_spill]] %s3561_s1 }
   0x2   :  { %3590 = sst [smem:[#allocation26_spill]] %s3568_s8 }
   0x3   :  { %3591 = sst [smem:[#allocation27_spill]] %s3569_s9 }
   0x4   :  { %3592 = sst [smem:[#allocation28_spill]] %s3570_s10 }
   0x5   :  { %3593 = sst [smem:[#allocation29_spill]] %s3571_s11 }
   0x6   :  { %17 = vsyncpa [#allocation3], 0 }
   0x7   :  { %19 = vsyncpa [#allocation3 + $0x1], 0 }
   0x8   :  { %20 = vsyncpa [#allocation6], 0 }
   0x9   :  { %21 = vsyncpa [#allocation9], 0 }
   0xa   :  { %22 = vsyncpa [#allocation4], 0 }
   0xb   :  { %24 = vsyncpa [#allocation4 + $0x1], 0 }
   0xc   :  { %25 = vsyncpa [#allocation13], 0 }
   0xd   :  { %27 = vsyncpa [#allocation13 + $0x1], 0 }
   0xe   :  { %28 = vsyncpa [#allocation16], 0 }
   0xf   :  { %30 = vsyncpa [#allocation16 + $0x1], 0  ;;  %s2961_s17 = smov 0   ;;  %s2963_s18 = smov 0  }
  0x10   :  { %s2965_s19 = smov 0   ;;  %s2967_s20 = smov 0  }
  0x11   :  { %s2969_s21 = smov 0   ;;  %s2971_s22 = smov 0  }
  0x12 LB: > { %3594 = sst [smem:[#allocation23_spill]] %s2861_s17  ;;  %s2992_s23 = sadd.s32 4294967295, %s2881_s22   ;;  %s2881_s22 = sphi %s2971_s22, %s36_s22   ;;  %s2877_s21 = sphi %s2969_s21, %s3634_s21   ;;  %s2873_s20 = sphi %s2967_s20, %s3633_s20   ;;  %s2869_s19 = sphi %s2965_s19, %s3632_s19   ;;  %s2865_s18 = sphi %s2963_s18, %s3631_s18   ;;  %s2861_s17 = sphi %s2961_s17, %s3630_s17  }
  0x13   : > { %s3572_s24 = sadd.s32 4294967294, %s2881_s22   ;;  %p70_p0 = scmp.ne.s32.totalorder %s2865_s18, %s2861_s17 }
  0x14   : > { %p3575_p1 = scmp.eq.s32.totalorder %s2992_s23, 0  ;;  %p259_p3 = scmp.eq.s32.totalorder %s3572_s24, 1 }
  0x15   : > { %p2048_p5 = scmp.ge.s32.totalorder %s2881_s22, 1  ;;  %p350_p7 = scmp.lt.s32.totalorder %s2881_s22, 3 }
  0x16   : > { %p3003_p4 = por %p3575_p1, %p70_p0  ;;  %p3008_p6 = por %p259_p3, %p70_p0 }
  0x17   : > { %p3013_p8 = pnand %p2048_p5, %p350_p7  ;;  %s2883_s28 = smov [#allocation5]  }
  0x18   : > { %s3595_s25 = scalar_select %p3003_p4, 1, 0 }
  0x19   : > { %s3596_s26 = scalar_select %p3008_p6, 1, 0 }
  0x1a   : > { %s3598_s27 = scalar_select %p3013_p8, 1, 0 }
  0x1b   : > { %3597 = sst [smem:[#allocation24_spill]] %s3596_s26  ;;  %s366_s29 = sshll.u32 %s2883_s28, 4  ;;  %s3017_s29 = int_to_ptr.vmem [resolvable:$true] %s366_s29 }
  0x1c   : > { %p2256_p9 = pneg %p3013_p8  ;;  %s2884_s12 = smov [#allocation8]  }
  0x1d   : > { %s399_s13 = sshll.u32 %s2884_s12, 4  ;;  %s3600_s1 = sld [smem:[#allocation25_spill]]  ;;  %s3028_s13 = int_to_ptr.vmem [resolvable:$true] %s399_s13 }
  0x1e   : > { %p3024_p11 = pnand %p2256_p9, %p3575_p1 }
  0x20   : > { %p3038_p13 = pneg %p3024_p11 }
  0x23   : > { %s2557_s16 = scalar_lea.hbm %s3600_s1, 512 }
  0x24   : > { %p2558_p12 = scmp.ne.s32.totalorder %s3600_s1, %s2557_s16  ;;  %p2564_p5 = scmp.lt.u32.totalorder %s2557_s16, %s3600_s1 }
  0x26   : > { %p2560_p0 = pnand %p3038_p13, %p2558_p12 }
  0x28   : > { %p2561_p3 = pneg %p2560_p0 }
  0x2a   : > { %p2566_p7 = pnand %p2564_p5, %p2561_p3 }
  0x2c   : > { %2569 = shalt.err (!%p2566_p7)
}
  0x2d   : > { %s2570_s24 = scalar_lea.vmem %s3017_s29, 512  ;;  %p2578_p2 = scmp.lt.s32.totalorder %s3017_s29, %s3017_s29 }
  0x2e   : > { %p2571_p9 = scmp.ne.s32.totalorder %s3017_s29, %s2570_s24  ;;  %p2579_p6 = scmp.lt.s32.totalorder %s2570_s24, %s2570_s24 }
  0x30   : > { %p2573_p10 = pnand %p2571_p9, %p3038_p13  ;;  %p2580_p12 = por %p2579_p6, %p2578_p2 }
  0x32   : > { %p2574_p1 = pneg %p2573_p10 }
  0x34   : > { %p2581_p0 = pnand %p2580_p12, %p2574_p1 }
  0x36   : > { %2584 = shalt.err (!%p2581_p0)
}
  0x37   : > { %s3580_s14 = smov 256   ;;  %s3581_s17 = smov 16  }
  0x38   : > { %2259 = dma.hbm_to_vmem [thread:$0]  (!%p3024_p11), %s3600_s1, 512, %s3017_s29, [#allocation6], %s3580_s14, %s3580_s14, %s3581_s17  }
  0x39   : > { %s2585_s24 = scalar_lea.hbm %s3564_s4, 4096 }
  0x3a   : > { %p2586_p1 = scmp.ne.s32.totalorder %s3564_s4, %s2585_s24  ;;  %p2592_p10 = scmp.lt.u32.totalorder %s2585_s24, %s3564_s4 }
  0x3c   : > { %p2588_p2 = pnand %p2586_p1, %p3038_p13 }
  0x3e   : > { %p2589_p6 = pneg %p2588_p2 }
  0x40   : > { %p2594_p3 = pnand %p2592_p10, %p2589_p6 }
  0x42   : > { %2597 = shalt.err (!%p2594_p3)
}
  0x43   : > { %s2598_s29 = scalar_lea.vmem %s3028_s13, 4096  ;;  %p2606_p12 = scmp.lt.s32.totalorder %s3028_s13, %s3028_s13 }
  0x44   : > { %p2599_p5 = scmp.ne.s32.totalorder %s3028_s13, %s2598_s29  ;;  %p2607_p0 = scmp.lt.s32.totalorder %s2598_s29, %s2598_s29 }
  0x46   : > { %p2601_p7 = pnand %p2599_p5, %p3038_p13  ;;  %p2608_p1 = por %p2607_p0, %p2606_p12 }
  0x48   : > { %p2602_p9 = pneg %p2601_p7 }
  0x4a   : > { %p2609_p2 = pnand %p2608_p1, %p2602_p9 }
  0x4c   : > { %2612 = shalt.err (!%p2609_p2)
}
  0x4d   : > { %s3584_s9 = smov 128   ;;  %s2888_s8 = smov 8  }
  0x4e   : > { %2265 = dma.hbm_to_vmem [thread:$0]  (!%p3024_p11), %s3564_s4, 4096, %s3028_s13, [#allocation9], %s3584_s9, %s3584_s9, %s2888_s8  }
  0x4f   : > { %s2889_s15 = smov [#allocation7]   ;;  %s2890_s28 = smov [#allocation10]  }
  0x50   : > { %s383_s16 = sshll.u32 %s2889_s15, 4  ;;  %s418_s12 = sshll.u32 %s2890_s28, 4  ;;  %s384_s16 = int_to_ptr.vmem [resolvable:$true] %s383_s16  ;;  %s3088_s12 = int_to_ptr.vmem [resolvable:$true] %s418_s12 }
  0x51   : > { %s2613_s14 = scalar_lea.hbm %s3562_s2, 512 }
  0x52   : > { %p2614_p6 = scmp.ne.s32.totalorder %s3562_s2, %s2613_s14  ;;  %p2620_p5 = scmp.lt.u32.totalorder %s2613_s14, %s3562_s2 }
  0x54   : > { %p2616_p10 = pnand %p2614_p6, %p3038_p13 }
  0x56   : > { %p2617_p3 = pneg %p2616_p10 }
  0x58   : > { %p2622_p7 = pnand %p2620_p5, %p2617_p3 }
  0x5a   : > { %2625 = shalt.err (!%p2622_p7)
}
  0x5b   : > { %s2626_s11 = scalar_lea.vmem %s384_s16, 512  ;;  %p2634_p1 = scmp.lt.s32.totalorder %s384_s16, %s384_s16 }
  0x5c   : > { %p2627_p9 = scmp.ne.s32.totalorder %s384_s16, %s2626_s11  ;;  %p2635_p2 = scmp.lt.s32.totalorder %s2626_s11, %s2626_s11 }
  0x5e   : > { %p2629_p12 = pnand %p2627_p9, %p3038_p13  ;;  %p2636_p4 = por %p2635_p2, %p2634_p1 }
  0x60   : > { %p2630_p0 = pneg %p2629_p12 }
  0x62   : > { %p2637_p8 = pnand %p2636_p4, %p2630_p0 }
  0x64   : > { %2640 = shalt.err (!%p2637_p8)
}
  0x65   : > { %s3602_s1 = smov 16   ;;  %s3603_s17 = smov 256  }
  0x66   : > { %2262 = dma.hbm_to_vmem [thread:$0]  (!%p3024_p11), %s3562_s2, 512, %s384_s16, [#allocation6], %s3603_s17, %s3603_s17, %s3602_s1  }
  0x67   : > { %s2641_s29 = scalar_lea.hbm %s3567_s7, 12288 }
  0x68   : > { %p2642_p6 = scmp.ne.s32.totalorder %s3567_s7, %s2641_s29  ;;  %p2648_p10 = scmp.lt.u32.totalorder %s2641_s29, %s3567_s7 }
  0x6a   : > { %p2644_p4 = pnand %p2642_p6, %p3038_p13 }
  0x6c   : > { %p2645_p8 = pneg %p2644_p4 }
  0x6e   : > { %p2650_p3 = pnand %p2648_p10, %p2645_p8 }
  0x70   : > { %2653 = shalt.err (!%p2650_p3)
}
  0x71   : > { %s2654_s16 = scalar_lea.vmem %s3088_s12, 12288  ;;  %p2662_p12 = scmp.lt.s32.totalorder %s3088_s12, %s3088_s12 }
  0x72   : > { %p2655_p5 = scmp.ne.s32.totalorder %s3088_s12, %s2654_s16  ;;  %p2663_p0 = scmp.lt.s32.totalorder %s2654_s16, %s2654_s16 }
  0x74   : > { %p2657_p7 = pnand %p2655_p5, %p3038_p13  ;;  %p2664_p1 = por %p2663_p0, %p2662_p12 }
  0x76   : > { %p2658_p9 = pneg %p2657_p7 }
  0x78   : > { %p2665_p2 = pnand %p2664_p1, %p2658_p9 }
  0x7a   : > { %2668 = shalt.err (!%p2665_p2)
}
  0x7b   : > { %s2891_s1 = smov 384   ;;  %s2892_s26 = smov 24  }
  0x7c   : > { %2268 = dma.hbm_to_vmem [thread:$0]  (!%p3024_p11), %s3567_s7, 12288, %s3088_s12, [#allocation9], %s2891_s1, %s2891_s1, %s2892_s26  }
  0x7d   : > { %s48_s15 = sadd.s32 1, %s2877_s21  ;;  %s57_s14 = sadd.s32 1, %s2869_s19 }
  0x7e   : > { %p50_p13 = scmp.ge.s32.totalorder %s48_s15, 2  ;;  %p64_p6 = scmp.ne.s32.totalorder %s2869_s19, %s2865_s18 }
  0x7f   : > { %p65_p4 = scmp.eq.s32.totalorder %s2881_s22, 0  ;;  %p2290_p8 = scmp.lt.s32.totalorder %s2881_s22, 2 }
  0x80   : > { %s3636_s15 = smov (%p50_p13, %s48_s15), 0  ;;  %p3604_p3 = scmp.eq.s32.totalorder %s2992_s23, 1 }
  0x81   : > { %p66_p10 = por %p65_p4, %p64_p6  ;;  %s52_s30 = ssub.s32 %s2877_s21, %s3636_s15 }
  0x82   : > { %p3144_p5 = por %p3604_p3, %p64_p6  ;;  %s432_s24 = sand.u32 1, %s2869_s19  }
  0x83   : > { %p55_p7 = scmp.eq.s32.totalorder %s52_s30, 0  ;;  %s2054_s12 = sshll.u32 %s432_s24, 4 }
  0x84   : > { %s2217_s29 = sshll.u32 %s2877_s21, 8  ;;  %s436_s1 = scalar_lea.vmem [#allocation2], %s2054_s12 }
  0x85   : > { %s3153_s10 = scalar_select %p55_p7, %s2869_s19, %s57_s14  }
  0x86   : > { %s3158_s16 = scalar_lea.hbm %s3560_s0, %s2217_s29  ;;  %s446_s26 = sshll.u32 %s436_s1, 4  ;;  %s3166_s26 = int_to_ptr.vmem [resolvable:$true] %s446_s26 }
  0x87   : > { %p3162_p11 = pnand %p2290_p8, %p66_p10  ;;  %s3168_s17 = scalar_lea.sflag [#allocation3], %s432_s24 }
  0x88   : > { %s2669_s14 = scalar_lea.hbm %s3158_s16, 256  ;;  %s2674_s29 = scalar_lea.hbm %s3560_s0, 512 }
  0x89   : > { %p2670_p9 = scmp.ne.s32.totalorder %s3158_s16, %s2669_s14  ;;  %p2671_p12 = pneg %p3162_p11 }
  0x8a   : > { %p2675_p2 = scmp.lt.u32.totalorder %s3158_s16, %s3560_s0  ;;  %p2676_p13 = scmp.lt.u32.totalorder %s2674_s29, %s2669_s14 }
  0x8b   : > { %p2672_p0 = pnand %p2671_p12, %p2670_p9  ;;  %p2678_p4 = scmp.lt.u32.totalorder %s2669_s14, %s3158_s16 }
  0x8c   : > { %p2677_p6 = por %p2676_p13, %p2675_p2 }
  0x8d   : > { %p2673_p1 = pneg %p2672_p0 }
  0x8e   : > { %p2679_p8 = por %p2678_p4, %p2677_p6 }
  0x90   : > { %p2680_p10 = pnand %p2679_p8, %p2673_p1 }
  0x92   : > { %2683 = shalt.err (!%p2680_p10)
}
  0x93   : > { %s2684_s24 = scalar_lea.vmem %s3166_s26, 256  ;;  %s2893_s1 = smov [#allocation2]  }
  0x94   : > { %p2685_p3 = scmp.ne.s32.totalorder %s3166_s26, %s2684_s24  ;;  %s2689_s30 = sshll.u32 %s2893_s1, 4  ;;  %s2690_s30 = int_to_ptr.vmem [resolvable:$false] %s2689_s30 }
  0x95   : > { %s2691_s12 = scalar_lea.vmem %s2690_s30, 512  ;;  %p2692_p0 = scmp.lt.s32.totalorder %s3166_s26, %s2690_s30 }
  0x96   : > { %p2687_p7 = pnand %p2685_p3, %p2671_p12  ;;  %p2693_p2 = scmp.lt.s32.totalorder %s2691_s12, %s2684_s24 }
  0x98   : > { %p2688_p9 = pneg %p2687_p7  ;;  %p2694_p13 = por %p2693_p2, %p2692_p0 }
  0x9a   : > { %p2695_p6 = pnand %p2694_p13, %p2688_p9 }
  0x9c   : > { %2698 = shalt.err (!%p2695_p6)
}
  0x9d   : > { %s3607_s14 = smov 128   ;;  %p3608_p12 = scmp.ne.s32.totalorder %s3598_s27, 0 }
  0x9e   : > { %2272 = dma.hbm_to_vmem [thread:$0]  (!%p3162_p11), %s3158_s16, 256, %s3166_s26, %s3168_s17, %s3607_s14, %s3607_s14, %s2888_s8  }
  0x9f   : > { %458 = sbr.rel (%p3608_p12) target bundleno = 1131 (0x46b), region = 52  ;;  %s3202_s29 = sand.u32 (!%p3608_p12), 1, %s2865_s18  }
  0xa0   : > { %s3205_s13 = sshll.u32 (!%p3608_p12), %s3202_s29, 4  ;;  %s461_s9 = scalar_lea.sflag (!%p3608_p12), [#allocation3], %s3202_s29 }
  0xa1   : > { %s464_s11 = scalar_lea.vmem (!%p3608_p12), [#allocation2], %s3205_s13  ;;  %p3609_p1 = scmp.ne.s32.totalorder (!%p3608_p12), %s3595_s25, 0 }
  0xa6   : > { %2836 = dma.done.wait (%p3609_p1), %s461_s9, 256  }
  0xa7   : > { %2838 = vsyncadd (%p3609_p1), %s461_s9, 4294967040  ;;  %p3610_p11 = scmp.eq.s32.totalorder %s2992_s23, 0 }
  0xa9   : > { %2840 = dma.done.wait (%p3610_p11), [#allocation6], 1024   ;;  %p3611_p4 = pmov %p3610_p11 }
  0xab   : > { %2842 = vsyncadd (%p3611_p4), [#allocation6], 4294966272  ;;  %p3612_p8 = pmov %p3611_p4 }
  0xac   : > { %p3613_p10 = pmov %p3611_p4 }
  0xad   : > { %2844 = dma.done.wait (%p3612_p8), [#allocation9], 16384  }
  0xae   : > { %2846 = vsyncadd (%p3613_p10), [#allocation9], 4294950912  ;;  %v541_v0 = vld [vmem:[%s464_s11] sm:$0xff]  ;;  %v542_v1 = vld [vmem:[%s464_s11 + $0x8] sm:$0xff]  ;;  %v570_v49 = vlaneseq  ;;  %s3271_s26 = scalar_lea.vmem [#allocation11], %s3205_s13  ;;  %s2894_s1 = smov 64  }
  0xaf   : > { %v3221_v2 = vunpack.c.l.bf16 %v541_v0  ;;  %v3223_v3 = vunpack.c.h.bf16 %v541_v0  ;;  %v3225_v4 = vunpack.c.l.bf16 %v542_v1  ;;  %v3227_v5 = vunpack.c.h.bf16 %v542_v1  ;;  %v2357_v6 = vld [vmem:[#allocation8 + $0x4] ss:$8 sps:$4 sm:$0xff]   ;;  %v2359_v7 = vld [vmem:[#allocation8] ss:$8 sps:$4 sm:$0xff]   ;;  %v2360_v8 = vld [vmem:[#allocation8 + $0x14] ss:$8 sps:$4 sm:$0xff]  }
  0xb0   : > { %790 = vmatprep.subr.bf16.mxu0 %v2357_v6  ;;  %v2362_v13 = vld [vmem:[#allocation8 + $0x10] ss:$8 sps:$4 sm:$0xff]   ;;  %v2363_v15 = vld [vmem:[#allocation8 + $0x24] ss:$8 sps:$4 sm:$0xff]   ;;  %v2365_v17 = vld [vmem:[#allocation8 + $0x20] ss:$8 sps:$4 sm:$0xff]  }
  0xb1   : > { %v547_v9 = vmul.f32 %v3221_v2, %v3221_v2  ;;  %v548_v10 = vmul.f32 %v3223_v3, %v3223_v3  ;;  %v549_v11 = vmul.f32 %v3225_v4, %v3225_v4  ;;  %v550_v12 = vmul.f32 %v3227_v5, %v3227_v5  ;;  %791 = vmatpush1.bf16.msra.mxu0 %v2359_v7  ;;  %v2366_v18 = vld [vmem:[#allocation8 + $0x34] ss:$8 sps:$4 sm:$0xff]   ;;  %v2368_v19 = vld [vmem:[#allocation8 + $0x30] ss:$8 sps:$4 sm:$0xff]   ;;  %v2369_v20 = vld [vmem:[#allocation8 + $0x44] ss:$8 sps:$4 sm:$0xff]  }
  0xb2   : > { %792 = vmatprep.subr.bf16.mxu0 %v2360_v8  ;;  %v2371_v21 = vld [vmem:[#allocation8 + $0x40] ss:$8 sps:$4 sm:$0xff]   ;;  %v2372_v22 = vld [vmem:[#allocation8 + $0x54] ss:$8 sps:$4 sm:$0xff]   ;;  %v2374_v23 = vld [vmem:[#allocation8 + $0x50] ss:$8 sps:$4 sm:$0xff]  }
  0xb3   : > { %v551_v14 = vadd.f32 %v548_v10, %v547_v9  ;;  %v554_v16 = vadd.f32 %v550_v12, %v549_v11  ;;  %v2375_v24 = vld [vmem:[#allocation8 + $0x64] ss:$8 sps:$4 sm:$0xff]   ;;  %v2377_v25 = vld [vmem:[#allocation8 + $0x60] ss:$8 sps:$4 sm:$0xff]   ;;  %v2378_v26 = vld [vmem:[#allocation8 + $0x74] ss:$8 sps:$4 sm:$0xff]  }
  0xb4   : > { %v2380_v27 = vld [vmem:[#allocation8 + $0x70] ss:$8 sps:$4 sm:$0xff]   ;;  %v2381_v28 = vld [vmem:[#allocation8 + $0x84] ss:$8 sps:$4 sm:$0xff]   ;;  %v2383_v29 = vld [vmem:[#allocation8 + $0x80] ss:$8 sps:$4 sm:$0xff]  }
  0xb5   : > { %552 = vadd.xlane.f32.xlu0 %v551_v14  ;;  %793 = vmatpush1.bf16.msra.mxu0 %v2362_v13  ;;  %v2384_v30 = vld [vmem:[#allocation8 + $0x94] ss:$8 sps:$4 sm:$0xff]   ;;  %v2386_v31 = vld [vmem:[#allocation8 + $0x90] ss:$8 sps:$4 sm:$0xff]   ;;  %v2387_v32 = vld [vmem:[#allocation8 + $0xa4] ss:$8 sps:$4 sm:$0xff]  }
  0xb6   : > { %794 = vmatprep.subr.bf16.mxu0 %v2363_v15  ;;  %v2389_v33 = vld [vmem:[#allocation8 + $0xa0] ss:$8 sps:$4 sm:$0xff]   ;;  %v2390_v34 = vld [vmem:[#allocation8 + $0xb4] ss:$8 sps:$4 sm:$0xff]   ;;  %v2392_v35 = vld [vmem:[#allocation8 + $0xb0] ss:$8 sps:$4 sm:$0xff]  }
  0xb7   : > { %v2393_v36 = vld [vmem:[#allocation8 + $0xc4] ss:$8 sps:$4 sm:$0xff]   ;;  %v2395_v37 = vld [vmem:[#allocation8 + $0xc0] ss:$8 sps:$4 sm:$0xff]   ;;  %v2396_v38 = vld [vmem:[#allocation8 + $0xd4] ss:$8 sps:$4 sm:$0xff]  }
  0xb8   : > { %v2398_v39 = vld [vmem:[#allocation8 + $0xd0] ss:$8 sps:$4 sm:$0xff]   ;;  %v2399_v40 = vld [vmem:[#allocation8 + $0xe4] ss:$8 sps:$4 sm:$0xff]   ;;  %v2401_v41 = vld [vmem:[#allocation8 + $0xe0] ss:$8 sps:$4 sm:$0xff]  }
  0xb9   : > { %555 = vadd.xlane.f32.xlu0 %v554_v16  ;;  %795 = vmatpush1.bf16.msra.mxu0 %v2365_v17  ;;  %v2402_v42 = vld [vmem:[#allocation8 + $0xf4] ss:$8 sps:$4 sm:$0xff]   ;;  %v2404_v43 = vld [vmem:[#allocation8 + $0xf0] ss:$8 sps:$4 sm:$0xff]   ;;  %v571_v51 = vshrl.u32 %v570_v49, 7  ;;  %s1758_s30 = sshll.u32 %s3271_s26, 4  ;;  %s3324_s30 = int_to_ptr.vmem [resolvable:$true] %s1758_s30 }
  0xba   : > { %796 = vmatprep.subr.bf16.mxu0 %v2366_v18  ;;  %v568_v55 = vld [vmem:[%s3563_s3] sm:$0x3]  ;;  %v2410_v11 = vld [vmem:[#allocation10 + $0xc] ss:$24 sps:$4 sm:$0xff]   ;;  %v2428_v18 = vld [vmem:[#allocation10 + $0x9c] ss:$24 sps:$4 sm:$0xff]  }
  0xbb   : > { %v3238_v52 = vsub.s32 0, %v571_v51  ;;  %v3240_v53 = vsub.s32 1, %v571_v51  ;;  %v2407_v9 = vld [vmem:[#allocation10] ss:$24 sps:$4 sm:$0xff]   ;;  %v2411_v12 = vld [vmem:[#allocation10 + $0x34] ss:$24 sps:$4 sm:$0xff]  }
  0xbc   : > { %v2408_v10 = vld [vmem:[#allocation10 + $0x8] ss:$24 sps:$4 sm:$0xff]   ;;  %v2417_v13 = vld [vmem:[#allocation10 + $0x64] ss:$24 sps:$4 sm:$0xff]   ;;  %v2423_v17 = vld [vmem:[#allocation10 + $0x94] ss:$24 sps:$4 sm:$0xff]  }
  0xbd   : > { %797 = vmatpush1.bf16.msra.mxu0 %v2368_v19  ;;  %v573_v57 = vrot.slane %v568_v55, %v3238_v52  ;;  %v577_v58 = vrot.slane %v568_v55, %v3240_v53  ;;  %v2422_v14 = vld [vmem:[#allocation10 + $0x6c] ss:$24 sps:$4 sm:$0xff]   ;;  %v2419_v15 = vld [vmem:[#allocation10 + $0x60] ss:$24 sps:$4 sm:$0xff]   ;;  %v2425_v19 = vld [vmem:[#allocation10 + $0x90] ss:$24 sps:$4 sm:$0xff]  }
  0xbe   : > { %798 = vmatprep.subr.bf16.mxu0 %v2369_v20  ;;  %v2420_v16 = vld [vmem:[#allocation10 + $0x68] ss:$24 sps:$4 sm:$0xff]   ;;  %v2426_v20 = vld [vmem:[#allocation10 + $0x98] ss:$24 sps:$4 sm:$0xff]   ;;  %s3327_s12 = sshll.u32 %s2873_s20, 8  ;;  %s3614_s11 = sld [smem:[#allocation26_spill]] }
  0xbf   : > { %s1727_s27 = scalar_lea.sflag [#allocation4], %s3202_s29  ;;  %s2699_s8 = scalar_lea.vmem %s3324_s30, 256 }
  0xc0   : > { %p2700_p3 = scmp.ne.s32.totalorder %s3324_s30, %s2699_s8  ;;  %s2895_s16 = smov [#allocation11]  }
  0xc1   : > { %799 = vmatpush1.bf16.msra.mxu0 %v2371_v21  ;;  %v2429_v21 = vld [vmem:[#allocation10 + $0xc4] ss:$24 sps:$4 sm:$0xff]  }
  0xc2   : > { %800 = vmatprep.subr.bf16.mxu0 %v2372_v22  ;;  %v2434_v22 = vld [vmem:[#allocation10 + $0xcc] ss:$24 sps:$4 sm:$0xff]   ;;  %p2701_p7 = pnand %p2700_p3, %p3144_p5 }
  0xc4   : > { %s3335_s25 = scalar_lea.hbm %s3614_s11, %s3327_s12  ;;  %p2702_p9 = pneg %p2701_p7 }
  0xc5   : > { %801 = vmatpush1.bf16.msra.mxu0 %v2374_v23  ;;  %v2431_v23 = vld [vmem:[#allocation10 + $0xc0] ss:$24 sps:$4 sm:$0xff]  }
  0xc6   : > { %802 = vmatprep.subr.bf16.mxu0 %v2375_v24  ;;  %v2432_v24 = vld [vmem:[#allocation10 + $0xc8] ss:$24 sps:$4 sm:$0xff]  }
  0xc9   : > { %803 = vmatpush1.bf16.msra.mxu0 %v2377_v25  ;;  %v2435_v25 = vld [vmem:[#allocation10 + $0xf4] ss:$24 sps:$4 sm:$0xff]  }
  0xca   : > { %804 = vmatprep.subr.bf16.mxu0 %v2378_v26  ;;  %v2440_v26 = vld [vmem:[#allocation10 + $0xfc] ss:$24 sps:$4 sm:$0xff]  }
  0xcd   : > { %805 = vmatpush1.bf16.msra.mxu0 %v2380_v27  ;;  %v2437_v27 = vld [vmem:[#allocation10 + $0xf0] ss:$24 sps:$4 sm:$0xff]  }
  0xce   : > { %806 = vmatprep.subr.bf16.mxu0 %v2381_v28  ;;  %v2438_v28 = vld [vmem:[#allocation10 + $0xf8] ss:$24 sps:$4 sm:$0xff]  }
  0xd1   : > { %807 = vmatpush1.bf16.msra.mxu0 %v2383_v29  ;;  %v2441_v29 = vld [vmem:[#allocation10 + $0x124] ss:$24 sps:$4 sm:$0xff]  }
  0xd2   : > { %808 = vmatprep.subr.bf16.mxu0 %v2384_v30  ;;  %v2446_v30 = vld [vmem:[#allocation10 + $0x12c] ss:$24 sps:$4 sm:$0xff]  }
  0xd5   : > { %809 = vmatpush1.bf16.msra.mxu0 %v2386_v31  ;;  %v2443_v31 = vld [vmem:[#allocation10 + $0x120] ss:$24 sps:$4 sm:$0xff]  }
  0xd6   : > { %810 = vmatprep.subr.bf16.mxu0 %v2387_v32  ;;  %v2444_v32 = vld [vmem:[#allocation10 + $0x128] ss:$24 sps:$4 sm:$0xff]  }
  0xd9   : > { %811 = vmatpush1.bf16.msra.mxu0 %v2389_v33  ;;  %v2447_v33 = vld [vmem:[#allocation10 + $0x154] ss:$24 sps:$4 sm:$0xff]  }
  0xda   : > { %812 = vmatprep.subr.bf16.mxu0 %v2390_v34  ;;  %v2452_v34 = vld [vmem:[#allocation10 + $0x15c] ss:$24 sps:$4 sm:$0xff]  }
  0xdd   : > { %813 = vmatpush1.bf16.msra.mxu0 %v2392_v35  ;;  %v2449_v35 = vld [vmem:[#allocation10 + $0x150] ss:$24 sps:$4 sm:$0xff]  }
  0xde   : > { %814 = vmatprep.subr.bf16.mxu0 %v2393_v36  ;;  %v2450_v36 = vld [vmem:[#allocation10 + $0x158] ss:$24 sps:$4 sm:$0xff]  }
  0xe1   : > { %815 = vmatpush1.bf16.msra.mxu0 %v2395_v37  ;;  %v2453_v37 = vld [vmem:[#allocation10 + $0x184] ss:$24 sps:$4 sm:$0xff]  }
  0xe2   : > { %816 = vmatprep.subr.bf16.mxu0 %v2396_v38  ;;  %v2458_v38 = vld [vmem:[#allocation10 + $0x18c] ss:$24 sps:$4 sm:$0xff]  }
  0xe5   : > { %817 = vmatpush1.bf16.msra.mxu0 %v2398_v39  ;;  %v2455_v39 = vld [vmem:[#allocation10 + $0x180] ss:$24 sps:$4 sm:$0xff]  }
  0xe6   : > { %818 = vmatprep.subr.bf16.mxu0 %v2399_v40  ;;  %v2456_v40 = vld [vmem:[#allocation10 + $0x188] ss:$24 sps:$4 sm:$0xff]  }
  0xe9   : > { %819 = vmatpush1.bf16.msra.mxu0 %v2401_v41  ;;  %v2459_v41 = vld [vmem:[#allocation10 + $0x1b4] ss:$24 sps:$4 sm:$0xff]  }
  0xea   : > { %820 = vmatprep.subr.bf16.mxu0 %v2402_v42  ;;  %v2464_v42 = vld [vmem:[#allocation10 + $0x1bc] ss:$24 sps:$4 sm:$0xff]  }
  0xed   : > { %821 = vmatpush1.bf16.msra.mxu0 %v2404_v43  ;;  %v2461_v43 = vld [vmem:[#allocation10 + $0x1b0] ss:$24 sps:$4 sm:$0xff]  }
  0xee   : > { %1504 = vmatprep.subr.bf16.mxu0 %v2410_v11  ;;  %v2473_v11 = vld [vmem:[#allocation10 + $0x210] ss:$24 sps:$4 sm:$0xff]  }
 0x142   : > { %v553_v44 = vpop.xlane.xlu0 %552 }
 0x143   : > { %v558_v45 = vmul.f32 0.00390625, %v553_v44  ;;  %v2462_v44 = vld [vmem:[#allocation10 + $0x1b8] ss:$24 sps:$4 sm:$0xff]  }
 0x145   : > { %v560_v46 = vadd.f32 1e-06, %v558_v45  ;;  %v618_v45 = vld [vmem:[%s3565_s5] sm:$0x3] }
 0x146   : > { %v556_v47 = vpop.xlane.xlu0 %555 }
 0x147   : > { %2549 = vrsqrt.f32 %v560_v46  ;;  %v559_v48 = vmul.f32 0.00390625, %v556_v47  ;;  %v623_v46 = vrot.slane %v618_v45, %v3238_v52  ;;  %v627_v47 = vrot.slane %v618_v45, %v3240_v53 }
 0x149   : > { %v561_v50 = vadd.f32 1e-06, %v559_v48 }
 0x14b   : > { %2551 = vrsqrt.f32 %v561_v50 }
 0x151   : > { %v2550_v54 = vpop.eup %2549 }
 0x152   : > { %v565_v56 = vmul.f32 %v2550_v54, %v3223_v3  ;;  %v564_v59 = vmul.f32 %v2550_v54, %v3221_v2  ;;  %v2405_v3 = vld [vmem:[#allocation10 + $0x4] ss:$24 sps:$4 sm:$0xff]  }
 0x153   : > { %1461 = vmatprep.subr.bf16.mxu1 %v2405_v3  ;;  %v2416_v2 = vld [vmem:[#allocation10 + $0x3c] ss:$24 sps:$4 sm:$0xff]   ;;  %v2470_v3 = vld [vmem:[#allocation10 + $0x1ec] ss:$24 sps:$4 sm:$0xff]  }
 0x154   : > { %v581_v63 = vmul.f32 %v577_v58, %v565_v56  ;;  %v580_v1 = vmul.f32 %v573_v57, %v564_v59  ;;  %1462 = vmatpush1.bf16.msra.mxu1 %v2407_v9  ;;  %v2468_v9 = vld [vmem:[#allocation10 + $0x1e8] ss:$24 sps:$4 sm:$0xff]  }
 0x155   : > { %v2552_v60 = vpop.eup %2551  ;;  %1463 = vmatprep.subr.bf16.mxu1 %v2411_v12  ;;  %v2476_v12 = vld [vmem:[#allocation10 + $0x21c] ss:$24 sps:$4 sm:$0xff]  }
 0x156   : > { %v567_v61 = vmul.f32 %v2552_v60, %v3227_v5  ;;  %v566_v62 = vmul.f32 %v2552_v60, %v3225_v4  ;;  %v2413_v5 = vld [vmem:[#allocation10 + $0x30] ss:$24 sps:$4 sm:$0xff]  }
 0x157   : > { %v2414_v4 = vld [vmem:[#allocation10 + $0x38] ss:$24 sps:$4 sm:$0xff]  }
 0x158   : > { %v583_v0 = vmul.f32 %v577_v58, %v567_v61  ;;  %v582_v6 = vmul.f32 %v573_v57, %v566_v62  ;;  %1464 = vmatpush1.bf16.msra.mxu1 %v2413_v5  ;;  %v2477_v5 = vld [vmem:[#allocation10 + $0x244] ss:$24 sps:$4 sm:$0xff]  }
 0x159   : > { %1465 = vmatprep.subr.bf16.mxu1 %v2417_v13  ;;  %v2480_v13 = vld [vmem:[#allocation10 + $0x248] ss:$24 sps:$4 sm:$0xff]  }
 0x15a   : > { %v585_v7 = vpack.c.bf16 %v583_v0, %v581_v63  ;;  %v584_v8 = vpack.c.bf16 %v582_v6, %v580_v1 }
 0x15c   : > { %822 = vmatprep.mubr.bf16.mxu0 %v585_v7  ;;  %1466 = vmatpush1.bf16.msra.mxu1 %v2419_v15  ;;  %v2465_v7 = vld [vmem:[#allocation10 + $0x1e4] ss:$24 sps:$4 sm:$0xff]   ;;  %v2483_v15 = vld [vmem:[#allocation10 + $0x274] ss:$24 sps:$4 sm:$0xff]  }
 0x15d   : > { %823 = vmatmul.mubr.bf16.vlgmr.msra.gmra.mrb[0].mxu0 %v584_v8  ;;  %1467 = vmatprep.subr.bf16.mxu1 %v2423_v17  ;;  %v2467_v8 = vld [vmem:[#allocation10 + $0x1e0] ss:$24 sps:$4 sm:$0xff]   ;;  %v2488_v17 = vld [vmem:[#allocation10 + $0x27c] ss:$24 sps:$4 sm:$0xff]  }
 0x15e   : > { %1505 = vmatpush1.bf16.msra.mxu0 %v2408_v10  ;;  %v2471_v10 = vld [vmem:[#allocation10 + $0x214] ss:$24 sps:$4 sm:$0xff]  }
 0x15f   : > { %1506 = vmatprep.subr.bf16.mxu0 %v2416_v2  ;;  %v2474_v2 = vld [vmem:[#allocation10 + $0x218] ss:$24 sps:$4 sm:$0xff]  }
 0x160   : > { %1468 = vmatpush1.bf16.msra.mxu1 %v2425_v19  ;;  %v2489_v19 = vld [vmem:[#allocation10 + $0x2a4] ss:$24 sps:$4 sm:$0xff]  }
 0x161   : > { %1469 = vmatprep.subr.bf16.mxu1 %v2429_v21  ;;  %v2491_v21 = vld [vmem:[#allocation10 + $0x2a0] ss:$24 sps:$4 sm:$0xff]  }
 0x162   : > { %1507 = vmatpush1.bf16.msra.mxu0 %v2414_v4  ;;  %v2479_v4 = vld [vmem:[#allocation10 + $0x240] ss:$24 sps:$4 sm:$0xff]  }
 0x163   : > { %1508 = vmatprep.subr.bf16.mxu0 %v2422_v14  ;;  %v2482_v14 = vld [vmem:[#allocation10 + $0x24c] ss:$24 sps:$4 sm:$0xff]  }
 0x164   : > { %1470 = vmatpush1.bf16.msra.mxu1 %v2431_v23  ;;  %v2495_v23 = vld [vmem:[#allocation10 + $0x2d4] ss:$24 sps:$4 sm:$0xff]  }
 0x165   : > { %1471 = vmatprep.subr.bf16.mxu1 %v2435_v25  ;;  %v2497_v25 = vld [vmem:[#allocation10 + $0x2d0] ss:$24 sps:$4 sm:$0xff]  }
 0x166   : > { %1509 = vmatpush1.bf16.msra.mxu0 %v2420_v16  ;;  %v2485_v16 = vld [vmem:[#allocation10 + $0x270] ss:$24 sps:$4 sm:$0xff]  }
 0x167   : > { %1510 = vmatprep.subr.bf16.mxu0 %v2428_v18  ;;  %v2486_v18 = vld [vmem:[#allocation10 + $0x278] ss:$24 sps:$4 sm:$0xff]  }
 0x168   : > { %1472 = vmatpush1.bf16.msra.mxu1 %v2437_v27  ;;  %v2503_v27 = vld [vmem:[#allocation10 + $0x14] ss:$24 sps:$4 sm:$0xff]  }
 0x169   : > { %1473 = vmatprep.subr.bf16.mxu1 %v2441_v29 }
 0x16a   : > { %1511 = vmatpush1.bf16.msra.mxu0 %v2426_v20  ;;  %v2494_v20 = vld [vmem:[#allocation10 + $0x2ac] ss:$24 sps:$4 sm:$0xff]  }
 0x16b   : > { %1512 = vmatprep.subr.bf16.mxu0 %v2434_v22  ;;  %v2492_v22 = vld [vmem:[#allocation10 + $0x2a8] ss:$24 sps:$4 sm:$0xff]  }
 0x16c   : > { %1474 = vmatpush1.bf16.msra.mxu1 %v2443_v31 }
 0x16d   : > { %1475 = vmatprep.subr.bf16.mxu1 %v2447_v33 }
 0x16e   : > { %1513 = vmatpush1.bf16.msra.mxu0 %v2432_v24  ;;  %v2500_v24 = vld [vmem:[#allocation10 + $0x2dc] ss:$24 sps:$4 sm:$0xff]  }
 0x16f   : > { %1514 = vmatprep.subr.bf16.mxu0 %v2440_v26  ;;  %v2498_v26 = vld [vmem:[#allocation10 + $0x2d8] ss:$24 sps:$4 sm:$0xff]  }
 0x170   : > { %1476 = vmatpush1.bf16.msra.mxu1 %v2449_v35  ;;  %v867_v35 = vld [vmem:[%s3566_s6] sm:$0x3] }
 0x171   : > { %1477 = vmatprep.subr.bf16.mxu1 %v2453_v37  ;;  %v876_v37 = vrot.slane %v867_v35, %v3240_v53  ;;  %v2509_v53 = vld [vmem:[#allocation10 + $0x74] ss:$24 sps:$4 sm:$0xff]  }
 0x172   : > { %1515 = vmatpush1.bf16.msra.mxu0 %v2438_v28 }
 0x173   : > { %1516 = vmatprep.subr.bf16.mxu0 %v2446_v30 }
 0x174   : > { %1478 = vmatpush1.bf16.msra.mxu1 %v2455_v39  ;;  %v872_v39 = vrot.slane %v867_v35, %v3238_v52  ;;  %v2504_v52 = vld [vmem:[#allocation10 + $0x40] ss:$24 sps:$4 sm:$0xff]  }
 0x175   : > { %1479 = vmatprep.subr.bf16.mxu1 %v2459_v41 }
 0x176   : > { %1517 = vmatpush1.bf16.msra.mxu0 %v2444_v32 }
 0x177   : > { %1518 = vmatprep.subr.bf16.mxu0 %v2452_v34 }
 0x178   : > { %1480 = vmatpush1.bf16.msra.mxu1 %v2461_v43 }
 0x179   : > { %1481 = vmatprep.subr.bf16.mxu1 %v2465_v7  ;;  %v2530_v7 = vld [vmem:[#allocation10 + $0x1c4] ss:$24 sps:$4 sm:$0xff]  }
 0x17a   : > { %1519 = vmatpush1.bf16.msra.mxu0 %v2450_v36 }
 0x17b   : > { %1520 = vmatprep.subr.bf16.mxu0 %v2458_v38 }
 0x17c   : > { %1482 = vmatpush1.bf16.msra.mxu1 %v2467_v8  ;;  %v2528_v8 = vld [vmem:[#allocation10 + $0x1c0] ss:$24 sps:$4 sm:$0xff]  }
 0x17d   : > { %1483 = vmatprep.subr.bf16.mxu1 %v2471_v10  ;;  %v2536_v10 = vld [vmem:[#allocation10 + $0x224] ss:$24 sps:$4 sm:$0xff]  }
 0x17e   : > { %1521 = vmatpush1.bf16.msra.mxu0 %v2456_v40 }
 0x17f   : > { %1522 = vmatprep.subr.bf16.mxu0 %v2464_v42 }
 0x180   : > { %1484 = vmatpush1.bf16.msra.mxu1 %v2473_v11  ;;  %v2534_v11 = vld [vmem:[#allocation10 + $0x220] ss:$24 sps:$4 sm:$0xff]  }
 0x181   : > { %1485 = vmatprep.subr.bf16.mxu1 %v2477_v5  ;;  %v2542_v5 = vld [vmem:[#allocation10 + $0x284] ss:$24 sps:$4 sm:$0xff]  }
 0x182   : > { %1523 = vmatpush1.bf16.msra.mxu0 %v2462_v44 }
 0x183   : > { %1524 = vmatprep.subr.bf16.mxu0 %v2470_v3  ;;  %v2533_v3 = vld [vmem:[#allocation10 + $0x1f4] ss:$24 sps:$4 sm:$0xff]  }
 0x184   : > { %1486 = vmatpush1.bf16.msra.mxu1 %v2479_v4  ;;  %v2540_v4 = vld [vmem:[#allocation10 + $0x280] ss:$24 sps:$4 sm:$0xff]  }
 0x185   : > { %1487 = vmatprep.subr.bf16.mxu1 %v2483_v15  ;;  %v2548_v15 = vld [vmem:[#allocation10 + $0x2e4] ss:$24 sps:$4 sm:$0xff]  }
 0x186   : > { %1525 = vmatpush1.bf16.msra.mxu0 %v2468_v9  ;;  %v2531_v9 = vld [vmem:[#allocation10 + $0x1f0] ss:$24 sps:$4 sm:$0xff]  }
 0x187   : > { %1526 = vmatprep.subr.bf16.mxu0 %v2476_v12  ;;  %v2539_v12 = vld [vmem:[#allocation10 + $0x254] ss:$24 sps:$4 sm:$0xff]  }
 0x188   : > { %1488 = vmatpush1.bf16.msra.mxu1 %v2485_v16  ;;  %v2546_v16 = vld [vmem:[#allocation10 + $0x2e0] ss:$24 sps:$4 sm:$0xff]  }
 0x189   : > { %1489 = vmatprep.subr.bf16.mxu1 %v2489_v19 }
 0x18a   : > { %1527 = vmatpush1.bf16.msra.mxu0 %v2474_v2  ;;  %v2537_v2 = vld [vmem:[#allocation10 + $0x250] ss:$24 sps:$4 sm:$0xff]  }
 0x18b   : > { %1528 = vmatprep.subr.bf16.mxu0 %v2482_v14  ;;  %v2543_v14 = vld [vmem:[#allocation10 + $0x2b0] ss:$24 sps:$4 sm:$0xff]  }
 0x18c   : > { %1490 = vmatpush1.bf16.msra.mxu1 %v2491_v21 }
 0x18d   : > { %1491 = vmatprep.subr.bf16.mxu1 %v2495_v23 }
 0x18e   : > { %1529 = vmatpush1.bf16.msra.mxu0 %v2480_v13  ;;  %v2545_v13 = vld [vmem:[#allocation10 + $0x2b4] ss:$24 sps:$4 sm:$0xff]  }
 0x18f   : > { %1530 = vmatprep.subr.bf16.mxu0 %v2488_v17 }
 0x190   : > { %1492 = vmatpush1.bf16.msra.mxu1 %v2497_v25 }
 0x191   : > { %1547 = vmatprep.subr.bf16.mxu1 %v2503_v27 }
 0x192   : > { %1531 = vmatpush1.bf16.msra.mxu0 %v2486_v18 }
 0x193   : > { %1532 = vmatprep.subr.bf16.mxu0 %v2494_v20 }
 0x196   : > { %1533 = vmatpush1.bf16.msra.mxu0 %v2492_v22 }
 0x197   : > { %1534 = vmatprep.subr.bf16.mxu0 %v2500_v24 }
 0x19a   : > { %1535 = vmatpush1.bf16.msra.mxu0 %v2498_v26 }
 0x230   : > { %v824_v48 = vpop.f32.mrb[0].mxu0 }
 0x231   : > { %v3256_v50 = vadd.f32 %v824_v48, %v623_v46  ;;  %v826_v51 = vpop.f32.mrb[1].mxu0  ;;  %v2501_v48 = vld [vmem:[#allocation10 + $0x10] ss:$24 sps:$4 sm:$0xff]  }
 0x232   : > { %v3258_v54 = vadd.f32 %v826_v51, %v627_v47  ;;  %v828_v55 = vpop.f32.mrb[2].mxu0 }
 0x233   : > { %v3260_v56 = vadd.f32 %v828_v55, %v623_v46  ;;  %v830_v57 = vpop.f32.mrb[3].mxu0  ;;  %v847_v58 = vmul.f32 %v3256_v50, %v3256_v50  ;;  %v2512_v55 = vld [vmem:[#allocation10 + $0xa4] ss:$24 sps:$4 sm:$0xff]  }
 0x234   : > { %v2218_v59 = vpack.c.bf16 %v3258_v54, %v3256_v50  ;;  %v3266_v60 = vadd.f32 %v830_v57, %v627_v47  ;;  %v848_v61 = vmul.f32 %v3258_v54, %v3258_v54  ;;  %v2515_v57 = vld [vmem:[#allocation10 + $0xd4] ss:$24 sps:$4 sm:$0xff]  }
 0x235   : > { %v849_v0 = vmul.f32 %v3260_v56, %v3260_v56 }
 0x236   : > { %845 = vst [vmem:[%s3271_s26] sm:$0xff] %v2218_v59  ;;  %v2219_v62 = vpack.c.bf16 %v3266_v60, %v3260_v56  ;;  %v851_v63 = vadd.f32 %v848_v61, %v847_v58  ;;  %v850_v1 = vmul.f32 %v3266_v60, %v3266_v60  ;;  %v2513_v58 = vld [vmem:[#allocation10 + $0xd0] ss:$24 sps:$4 sm:$0xff]   ;;  %v2518_v59 = vld [vmem:[#allocation10 + $0x104] ss:$24 sps:$4 sm:$0xff]   ;;  %v2521_v61 = vld [vmem:[#allocation10 + $0x134] ss:$24 sps:$4 sm:$0xff]  }
 0x238   : > { %846 = vst [vmem:[%s3271_s26 + $0x8] sm:$0xff] %v2219_v62  ;;  %852 = vadd.xlane.f32.xlu1 %v851_v63  ;;  %v854_v6 = vadd.f32 %v850_v1, %v849_v0  ;;  %v2519_v62 = vld [vmem:[#allocation10 + $0x130] ss:$24 sps:$4 sm:$0xff]   ;;  %v2524_v63 = vld [vmem:[#allocation10 + $0x164] ss:$24 sps:$4 sm:$0xff]   ;;  %s2703_s26 = sshll.u32 %s2895_s16, 4  ;;  %s2704_s26 = int_to_ptr.vmem [resolvable:$false] %s2703_s26 }
 0x239   : > { %v2522_v0 = vld [vmem:[#allocation10 + $0x160] ss:$24 sps:$4 sm:$0xff]   ;;  %v2527_v1 = vld [vmem:[#allocation10 + $0x194] ss:$24 sps:$4 sm:$0xff]   ;;  %s2705_s20 = scalar_lea.vmem %s2704_s26, 512  ;;  %p2706_p0 = scmp.lt.s32.totalorder %s3324_s30, %s2704_s26 }
 0x23a   : > { %p2707_p2 = scmp.lt.s32.totalorder %s2705_s20, %s2699_s8 }
 0x23c   : > { %855 = vadd.xlane.f32.xlu1 %v854_v6  ;;  %v2525_v6 = vld [vmem:[#allocation10 + $0x190] ss:$24 sps:$4 sm:$0xff]   ;;  %p2708_p13 = por %p2707_p2, %p2706_p0 }
 0x23e   : > { %p2709_p6 = pnand %p2708_p13, %p2702_p9 }
 0x2c5   : > { %v853_v28 = vpop.xlane.xlu1 %852 }
 0x2c6   : > { %v857_v29 = vmul.f32 0.00390625, %v853_v28 }
 0x2c8   : > { %v859_v30 = vadd.f32 1e-06, %v857_v29 }
 0x2c9   : > { %v856_v31 = vpop.xlane.xlu1 %855 }
 0x2ca   : > { %2553 = vrsqrt.f32 %v859_v30  ;;  %v858_v32 = vmul.f32 0.00390625, %v856_v31 }
 0x2cc   : > { %v860_v33 = vadd.f32 1e-06, %v858_v32 }
 0x2ce   : > { %2555 = vrsqrt.f32 %v860_v33 }
 0x2d4   : > { %v2554_v34 = vpop.eup %2553 }
 0x2d5   : > { %v864_v36 = vmul.f32 %v2554_v34, %v3258_v54  ;;  %v863_v38 = vmul.f32 %v2554_v34, %v3256_v50  ;;  %v2506_v54 = vld [vmem:[#allocation10 + $0x44] ss:$24 sps:$4 sm:$0xff]   ;;  %v2507_v50 = vld [vmem:[#allocation10 + $0x70] ss:$24 sps:$4 sm:$0xff]  }
 0x2d7   : > { %v880_v43 = vmul.f32 %v876_v37, %v864_v36  ;;  %v879_v45 = vmul.f32 %v872_v39, %v863_v38 }
 0x2d8   : > { %v2556_v40 = vpop.eup %2555 }
 0x2d9   : > { %v866_v41 = vmul.f32 %v2556_v40, %v3266_v60  ;;  %v865_v42 = vmul.f32 %v2556_v40, %v3260_v56  ;;  %v2510_v56 = vld [vmem:[#allocation10 + $0xa0] ss:$24 sps:$4 sm:$0xff]  }
 0x2da   : > { %v2516_v60 = vld [vmem:[#allocation10 + $0x100] ss:$24 sps:$4 sm:$0xff]  }
 0x2db   : > { %v882_v44 = vmul.f32 %v876_v37, %v866_v41  ;;  %v881_v46 = vmul.f32 %v872_v39, %v865_v42 }
 0x2dd   : > { %v884_v47 = vpack.c.bf16 %v882_v44, %v880_v43  ;;  %v3290_v51 = vpack.c.bf16 %v881_v46, %v879_v45 }
 0x2df   : > { %1493 = vmatprep.mubr.bf16.mxu1 %v884_v47  ;;  %1536 = vmatprep.mubr.bf16.mxu0 %v884_v47 }
 0x2e0   : > { %1494 = vmatmul.mubr.bf16.vlgmr.msra.gmra.mrb[0].mxu1 %v3290_v51  ;;  %1537 = vmatmul.mubr.bf16.vlgmr.msra.gmra.mrb[4].mxu0 %v3290_v51 }
 0x2e1   : > { %1548 = vmatpush1.bf16.msra.mxu1 %v2501_v48  ;;  %1579 = vmatprep.mubr.bf16.mxu1 %v884_v47 }
 0x2e2   : > { %1549 = vmatprep.subr.bf16.mxu1 %v2506_v54 }
 0x2e5   : > { %1550 = vmatpush1.bf16.msra.mxu1 %v2504_v52 }
 0x2e6   : > { %1551 = vmatprep.subr.bf16.mxu1 %v2509_v53 }
 0x2e9   : > { %1552 = vmatpush1.bf16.msra.mxu1 %v2507_v50 }
 0x2ea   : > { %1553 = vmatprep.subr.bf16.mxu1 %v2512_v55 }
 0x2ed   : > { %1554 = vmatpush1.bf16.msra.mxu1 %v2510_v56 }
 0x2ee   : > { %1555 = vmatprep.subr.bf16.mxu1 %v2515_v57 }
 0x2f1   : > { %1556 = vmatpush1.bf16.msra.mxu1 %v2513_v58 }
 0x2f2   : > { %1557 = vmatprep.subr.bf16.mxu1 %v2518_v59 }
 0x2f5   : > { %1558 = vmatpush1.bf16.msra.mxu1 %v2516_v60 }
 0x2f6   : > { %1559 = vmatprep.subr.bf16.mxu1 %v2521_v61 }
 0x2f9   : > { %1560 = vmatpush1.bf16.msra.mxu1 %v2519_v62 }
 0x2fa   : > { %1561 = vmatprep.subr.bf16.mxu1 %v2524_v63 }
 0x2fd   : > { %1562 = vmatpush1.bf16.msra.mxu1 %v2522_v0 }
 0x2fe   : > { %1563 = vmatprep.subr.bf16.mxu1 %v2527_v1 }
 0x301   : > { %1564 = vmatpush1.bf16.msra.mxu1 %v2525_v6 }
 0x302   : > { %1565 = vmatprep.subr.bf16.mxu1 %v2530_v7 }
 0x305   : > { %1566 = vmatpush1.bf16.msra.mxu1 %v2528_v8 }
 0x306   : > { %1567 = vmatprep.subr.bf16.mxu1 %v2533_v3 }
 0x309   : > { %1568 = vmatpush1.bf16.msra.mxu1 %v2531_v9 }
 0x30a   : > { %1569 = vmatprep.subr.bf16.mxu1 %v2536_v10 }
 0x30d   : > { %1570 = vmatpush1.bf16.msra.mxu1 %v2534_v11 }
 0x30e   : > { %1571 = vmatprep.subr.bf16.mxu1 %v2539_v12 }
 0x311   : > { %1572 = vmatpush1.bf16.msra.mxu1 %v2537_v2 }
 0x312   : > { %1573 = vmatprep.subr.bf16.mxu1 %v2542_v5 }
 0x315   : > { %1574 = vmatpush1.bf16.msra.mxu1 %v2540_v4 }
 0x316   : > { %1575 = vmatprep.subr.bf16.mxu1 %v2545_v13 }
 0x319   : > { %1576 = vmatpush1.bf16.msra.mxu1 %v2543_v14 }
 0x31a   : > { %1577 = vmatprep.subr.bf16.mxu1 %v2548_v15 }
 0x31d   : > { %1578 = vmatpush1.bf16.msra.mxu1 %v2546_v16 }
 0x320   : > { %1580 = vmatmul.mubr.bf16.vlgmr.msra.gmra.mrb[4].mxu1 %v3290_v51 }
 0x3b3   : > { %v3295_v17 = vpop.f32.mrb[0].mxu1  ;;  %v3297_v18 = vpop.f32.mrb[4].mxu0 }
 0x3b4   : > { %v3299_v19 = vpop.f32.mrb[5].mxu0  ;;  %1627 = vrot.lane.b32.xlu0 %v3295_v17, %s2894_s1  ;;  %v3303_v20 = vpop.f32.mrb[1].mxu1 }
 0x3b5   : > { %v3305_v21 = vpop.f32.mrb[6].mxu0  ;;  %1631 = vrot.lane.b32.xlu1 %v3303_v20, %s2894_s1  ;;  %v3309_v22 = vpop.f32.mrb[2].mxu1 }
 0x3b6   : > { %v3311_v23 = vpop.f32.mrb[3].mxu1  ;;  %v3313_v24 = vpop.f32.mrb[7].mxu0 }
 0x3b8   : > { %1670 = vrot.lane.b32.xlu0 %v3297_v18, %s2894_s1 }
 0x3b9   : > { %1629 = vrot.lane.b32.xlu1 %v3309_v22, %s2894_s1 }
 0x3bc   : > { %1674 = vrot.lane.b32.xlu0 %v3299_v19, %s2894_s1 }
 0x3bd   : > { %1672 = vrot.lane.b32.xlu1 %v3305_v21, %s2894_s1 }
 0x3c1   : > { %1633 = vrot.lane.b32.xlu1 %v3311_v23, %s2894_s1 }
 0x3c2   : > { %2712 = shalt.err (!%p2709_p6)
}
 0x3c3   : > { %s2713_s17 = scalar_lea.hbm %s3335_s25, 256  ;;  %s2717_s9 = scalar_lea.hbm %s3614_s11, 512 }
 0x3c4   : > { %p2714_p12 = scmp.ne.s32.totalorder %s3335_s25, %s2713_s17  ;;  %p2718_p4 = scmp.lt.u32.totalorder %s3335_s25, %s3614_s11 }
 0x3c5   : > { %p2719_p8 = scmp.lt.u32.totalorder %s2717_s9, %s2713_s17  ;;  %p2721_p3 = scmp.lt.u32.totalorder %s2713_s17, %s3335_s25 }
 0x3c6   : > { %p2715_p1 = pnand %p2714_p12, %p3144_p5 }
 0x3c7   : > { %p2720_p10 = por %p2719_p8, %p2718_p4 }
 0x3c8   : > { %p2716_p11 = pneg %p2715_p1 }
 0x3c9   : > { %p2722_p7 = por %p2721_p3, %p2720_p10 }
 0x3cb   : > { %p2723_p9 = pnand %p2722_p7, %p2716_p11 }
 0x3cd   : > { %2726 = shalt.err (!%p2723_p9)
}
 0x3ce   : > { %s3585_s8 = smov 128   ;;  %s3587_s20 = smov 8   ;;  %1676 = vrot.lane.b32.xlu1 %v3313_v24, %s2894_s1 }
 0x3cf   : > { %2248 = dma.vmem_to_hbm [thread:$0]  (%p3144_p5), %s3324_s30, 256, %s3335_s25, %s1727_s27, %s3585_s8, %s3585_s8, %s3587_s20  }
 0x3d0   : > { %s533_s17 = scalar_lea.vmem [#allocation15], %s3205_s13  ;;  %s3615_s25 = sld [smem:[#allocation29_spill]] }
 0x3d1   : > { %s1815_s24 = sshll.u32 %s533_s17, 4  ;;  %s2898_s16 = smov [#allocation15]   ;;  %s3367_s24 = int_to_ptr.vmem [resolvable:$true] %s1815_s24 }
 0x3d2   : > { %s2727_s9 = scalar_lea.vmem %s3367_s24, 256  ;;  %s2731_s26 = sshll.u32 %s2898_s16, 4  ;;  %s2732_s26 = int_to_ptr.vmem [resolvable:$false] %s2731_s26 }
 0x3d3   : > { %p2728_p0 = scmp.ne.s32.totalorder %s3367_s24, %s2727_s9  ;;  %s2733_s8 = scalar_lea.vmem %s2732_s26, 512 }
 0x3d4   : > { %p2734_p6 = scmp.lt.s32.totalorder %s3367_s24, %s2732_s26  ;;  %p2735_p12 = scmp.lt.s32.totalorder %s2733_s8, %s2727_s9 }
 0x3d5   : > { %p2729_p2 = pnand %p2728_p0, %p3144_p5 }
 0x3d6   : > { %s3373_s27 = scalar_lea.hbm %s3615_s25, %s3327_s12  ;;  %p2736_p1 = por %p2735_p12, %p2734_p6 }
 0x3d7   : > { %p2730_p13 = pneg %p2729_p2 }
 0x3d9   : > { %p2737_p11 = pnand %p2736_p1, %p2730_p13 }
 0x3f3   : > { %v1581_v25 = vpop.f32.mrb[4].mxu1 }
 0x3f4   : > { %v1583_v26 = vpop.f32.mrb[5].mxu1 }
 0x3f5   : > { %v2224_v27 = vpack.c.bf16 %v1583_v26, %v1581_v25  ;;  %v1585_v28 = vpop.f32.mrb[6].mxu1 }
 0x3f6   : > { %v1587_v29 = vpop.f32.mrb[7].mxu1 }
 0x3f7   : > { %1724 = vst [vmem:[%s533_s17] sm:$0xff] %v2224_v27  ;;  %v2225_v30 = vpack.c.bf16 %v1587_v29, %v1585_v28 }
 0x3f9   : > { %1725 = vst [vmem:[%s533_s17 + $0x8] sm:$0xff] %v2225_v30 }
 0x3fa   : > { %2740 = shalt.err (!%p2737_p11)
}
 0x3fb   : > { %s2741_s17 = scalar_lea.hbm %s3373_s27, 256  ;;  %s2745_s16 = scalar_lea.hbm %s3615_s25, 512 }
 0x3fc   : > { %p2742_p4 = scmp.ne.s32.totalorder %s3373_s27, %s2741_s17  ;;  %p2746_p3 = scmp.lt.u32.totalorder %s3373_s27, %s3615_s25 }
 0x3fd   : > { %p2747_p7 = scmp.lt.u32.totalorder %s2745_s16, %s2741_s17  ;;  %p2749_p0 = scmp.lt.u32.totalorder %s2741_s17, %s3373_s27 }
 0x3fe   : > { %p2743_p8 = pnand %p2742_p4, %p3144_p5 }
 0x3ff   : > { %p2748_p9 = por %p2747_p7, %p2746_p3 }
 0x400   : > { %p2744_p10 = pneg %p2743_p8 }
 0x401   : > { %p2750_p2 = por %p2749_p0, %p2748_p9 }
 0x403   : > { %p2751_p13 = pnand %p2750_p2, %p2744_p10 }
 0x405   : > { %2754 = shalt.err (!%p2751_p13)
}
 0x406   : > { %s3616_s8 = smov 128   ;;  %s3617_s9 = scalar_lea.sflag [#allocation16], %s3202_s29  ;;  %v3403_v31 = vand.u32 127, %v570_v49  ;;  %v1590_v34 = vld [vmem:[#allocation5] sm:$0xff]  ;;  %v1591_v37 = vld [vmem:[#allocation5 + $0x8] sm:$0xff]  ;;  %v1592_v0 = vld [vmem:[#allocation5 + $0x10] sm:$0xff] }
 0x407   : > { %2251 = dma.vmem_to_hbm [thread:$0]  (%p3144_p5), %s3367_s24, 256, %s3373_s27, %s3617_s9, %s3616_s8, %s3616_s8, %s3587_s20   ;;  %v1594_v38 = vld [vmem:[#allocation7] sm:$0xff]  ;;  %v1595_v39 = vld [vmem:[#allocation7 + $0x8] sm:$0xff]  ;;  %v1644_v44 = vmul.f32 %v1590_v34, %v3295_v17  ;;  %v1645_v45 = vmul.f32 %v1591_v37, %v3303_v20  ;;  %v1686_v60 = vmul.f32 %v1590_v34, %v3297_v18  ;;  %v1687_v61 = vmul.f32 %v1591_v37, %v3299_v19  ;;  %v1593_v1 = vld [vmem:[#allocation5 + $0x18] sm:$0xff] }
 0x408   : > { %v1600_v32 = vadd.s32 128, %v3403_v31  ;;  %vm1635_vm0 = vcmp.lt.s32.totalorder %v3403_v31, 64  ;;  %vm1625_vm1 = vcmp.ge.s32.totalorder %v3403_v31, 64  ;;  %s3427_s29 = scalar_lea.vmem [#allocation12], %s3205_s13  ;;  %v1596_v8 = vld [vmem:[#allocation7 + $0x10] sm:$0xff]  ;;  %v1597_v3 = vld [vmem:[#allocation7 + $0x18] sm:$0xff]  ;;  %v1646_v4 = vmul.f32 %v1592_v0, %v3309_v22 }
 0x409   : > { %v1647_v13 = vmul.f32 %v1593_v1, %v3311_v23  ;;  %s1731_s24 = sand.u32 1, %s2992_s23   ;;  %s3448_s27 = scalar_lea.vmem [#allocation14], %s3205_s13  ;;  %v1688_v22 = vmul.f32 %v1592_v0, %v3305_v21  ;;  %v1689_v26 = vmul.f32 %v1593_v1, %v3313_v24 }
 0x40a   : > { %v1612_v33 = vand.u32 127, %v1600_v32  ;;  %s1777_s1 = sshll.u32 %s3427_s29, 4  ;;  %s3620_s17 = sld [smem:[#allocation27_spill]]  ;;  %s3468_s1 = int_to_ptr.vmem [resolvable:$true] %s1777_s1 }
 0x40b   : > { %s3472_s26 = scalar_lea.sflag [#allocation13], %s1731_s24  ;;  %s2755_s9 = scalar_lea.vmem %s3468_s1, 256 }
 0x40c   : > { %vm3408_vm2 = vcmp.ge.s32.totalorder %v1612_v33, 64  ;;  %p2756_p6 = scmp.ne.s32.totalorder %s3468_s1, %s2755_s9  ;;  %s2899_s20 = smov [#allocation12]  }
 0x40d   : > { %s2759_s23 = sshll.u32 %s2899_s20, 4  ;;  %s2760_s23 = int_to_ptr.vmem [resolvable:$false] %s2759_s23 }
 0x40e   : > { %p2757_p12 = pnand %p2756_p6, %p3144_p5  ;;  %s2761_s13 = scalar_lea.vmem %s2760_s23, 512 }
 0x40f   : > { %p2762_p11 = scmp.lt.s32.totalorder %s3468_s1, %s2760_s23  ;;  %p2763_p4 = scmp.lt.s32.totalorder %s2761_s13, %s2755_s9 }
 0x410   : > { %s3621_s14 = smov %s3620_s17  ;;  %s3466_s30 = scalar_lea.hbm %s3620_s17, %s3327_s12 }
 0x411   : > { %p2758_p1 = pneg %p2757_p12  ;;  %p2764_p8 = por %p2763_p4, %p2762_p11 }
 0x413   : > { %p2765_p10 = pnand %p2764_p8, %p2758_p1 }
 0x426   : > { %v1628_v35 = vpop.permute.xlu0 %1627 }
 0x427   : > { %v1632_v40 = vpop.permute.xlu1 %1631 }
 0x428   : > { %v1636_v49 = vsel %vm1635_vm0, %v1628_v35, %v1632_v40  ;;  %v1638_v41 = vsel %vm1635_vm0, %v1632_v40, %v1628_v35 }
 0x429   : > { %v1640_v42 = vsel %vm1625_vm1, %v1638_v41, %v1636_v49  ;;  %v1641_v43 = vsel %vm3408_vm2, %v1636_v49, %v1638_v41 }
 0x42a   : > { %v1648_v46 = vmul.f32 %v1640_v42, %v1594_v38  ;;  %v1649_v47 = vmul.f32 %v1641_v43, %v1595_v39  ;;  %v1671_v48 = vpop.permute.xlu0 %1670 }
 0x42b   : > { %v1630_v51 = vpop.permute.xlu1 %1629 }
 0x42c   : > { %v1652_v54 = vadd.f32 %v1648_v46, %v1644_v44  ;;  %v1653_v52 = vadd.f32 %v1649_v47, %v1645_v45 }
 0x42e   : > { %v2220_v53 = vpack.c.bf16 %v1653_v52, %v1652_v54  ;;  %v1675_v50 = vpop.permute.xlu0 %1674 }
 0x42f   : > { %v1678_v55 = vsel %vm1635_vm0, %v1671_v48, %v1675_v50  ;;  %v1680_v56 = vsel %vm1635_vm0, %v1675_v50, %v1671_v48  ;;  %v1673_v57 = vpop.permute.xlu1 %1672 }
 0x430   : > { %1668 = vst [vmem:[%s3427_s29] sm:$0xff] %v2220_v53  ;;  %v1682_v58 = vsel %vm1625_vm1, %v1680_v56, %v1678_v55  ;;  %v1683_v59 = vsel %vm3408_vm2, %v1678_v55, %v1680_v56 }
 0x431   : > { %v1690_v62 = vmul.f32 %v1682_v58, %v1594_v38  ;;  %v1691_v63 = vmul.f32 %v1683_v59, %v1595_v39 }
 0x433   : > { %v1694_v6 = vadd.f32 %v1690_v62, %v1686_v60  ;;  %v1695_v7 = vadd.f32 %v1691_v63, %v1687_v61  ;;  %v1634_v9 = vpop.permute.xlu1 %1633 }
 0x434   : > { %v1637_v10 = vsel %vm1635_vm0, %v1630_v51, %v1634_v9  ;;  %v1639_v11 = vsel %vm1635_vm0, %v1634_v9, %v1630_v51 }
 0x435   : > { %v2222_v12 = vpack.c.bf16 %v1695_v7, %v1694_v6  ;;  %v1642_v2 = vsel %vm1625_vm1, %v1639_v11, %v1637_v10  ;;  %v1643_v5 = vsel %vm3408_vm2, %v1637_v10, %v1639_v11 }
 0x436   : > { %v1650_v14 = vmul.f32 %v1642_v2, %v1596_v8  ;;  %v1651_v15 = vmul.f32 %v1643_v5, %v1597_v3 }
 0x437   : > { %1710 = vst [vmem:[%s3448_s27] sm:$0xff] %v2222_v12 }
 0x438   : > { %v1654_v17 = vadd.f32 %v1650_v14, %v1646_v4  ;;  %v1655_v18 = vadd.f32 %v1651_v15, %v1647_v13 }
 0x43a   : > { %v2221_v27 = vpack.c.bf16 %v1655_v18, %v1654_v17 }
 0x43c   : > { %1669 = vst [vmem:[%s3427_s29 + $0x8] sm:$0xff] %v2221_v27 }
 0x440   : > { %v1677_v16 = vpop.permute.xlu1 %1676 }
 0x441   : > { %v1679_v19 = vsel %vm1635_vm0, %v1673_v57, %v1677_v16  ;;  %v1681_v20 = vsel %vm1635_vm0, %v1677_v16, %v1673_v57 }
 0x442   : > { %v1684_v23 = vsel %vm1625_vm1, %v1681_v20, %v1679_v19  ;;  %v1685_v25 = vsel %vm3408_vm2, %v1679_v19, %v1681_v20 }
 0x443   : > { %v1692_v28 = vmul.f32 %v1684_v23, %v1596_v8  ;;  %v1693_v29 = vmul.f32 %v1685_v25, %v1597_v3 }
 0x445   : > { %v1696_v21 = vadd.f32 %v1692_v28, %v1688_v22  ;;  %v1697_v30 = vadd.f32 %v1693_v29, %v1689_v26 }
 0x446   : > { %2768 = shalt.err (!%p2765_p10)
}
 0x447   : > { %s2769_s29 = scalar_lea.hbm %s3466_s30, 256  ;;  %s2773_s20 = scalar_lea.hbm %s3621_s14, 512 }
 0x448   : > { %p2770_p3 = scmp.ne.s32.totalorder %s3466_s30, %s2769_s29  ;;  %p2774_p0 = scmp.lt.u32.totalorder %s3466_s30, %s3621_s14 }
 0x449   : > { %p2775_p2 = scmp.lt.u32.totalorder %s2773_s20, %s2769_s29  ;;  %p2777_p6 = scmp.lt.u32.totalorder %s2769_s29, %s3466_s30 }
 0x44a   : > { %p2771_p7 = pnand %p2770_p3, %p3144_p5 }
 0x44b   : > { %p2776_p13 = por %p2775_p2, %p2774_p0 }
 0x44c   : > { %p2772_p9 = pneg %p2771_p7 }
 0x44d   : > { %p2778_p12 = por %p2777_p6, %p2776_p13 }
 0x44f   : > { %p2779_p1 = pnand %p2778_p12, %p2772_p9 }
 0x451   : > { %2782 = shalt.err (!%p2779_p1)
}
 0x452   : > { %s3622_s9 = smov 8   ;;  %s3623_s16 = sshll.u32 %s3448_s27, 4  ;;  %v2223_v24 = vpack.c.bf16 %v1697_v30, %v1696_v21  ;;  %s3501_s16 = int_to_ptr.vmem [resolvable:$true] %s3623_s16 }
 0x453   : > { %2249 = dma.vmem_to_hbm [thread:$0]  (%p3144_p5), %s3468_s1, 256, %s3466_s30, %s3472_s26, %s3616_s8, %s3616_s8, %s3622_s9  }
 0x454   : > { %s3624_s24 = sld [smem:[#allocation28_spill]]  ;;  %1711 = vst [vmem:[%s3448_s27 + $0x8] sm:$0xff] %v2223_v24  ;;  %s2783_s20 = scalar_lea.vmem %s3501_s16, 256 }
 0x455   : > { %p2784_p11 = scmp.ne.s32.totalorder %s3501_s16, %s2783_s20  ;;  %s2900_s23 = smov [#allocation14]  }
 0x456   : > { %s2787_s1 = sshll.u32 %s2900_s23, 4  ;;  %s2788_s1 = int_to_ptr.vmem [resolvable:$false] %s2787_s1 }
 0x457   : > { %p2785_p4 = pnand %p2784_p11, %p3144_p5  ;;  %s2789_s30 = scalar_lea.vmem %s2788_s1, 512 }
 0x458   : > { %p2790_p10 = scmp.lt.s32.totalorder %s3501_s16, %s2788_s1  ;;  %p2791_p3 = scmp.lt.s32.totalorder %s2789_s30, %s2783_s20 }
 0x459   : > { %p2786_p8 = pneg %p2785_p4 }
 0x45a   : > { %s3507_s17 = scalar_lea.hbm %s3624_s24, %s3327_s12  ;;  %p2792_p7 = por %p2791_p3, %p2790_p10 }
 0x45c   : > { %p2793_p9 = pnand %p2792_p7, %p2786_p8 }
 0x45e   : > { %2796 = shalt.err (!%p2793_p9)
}
 0x45f   : > { %s2797_s12 = scalar_lea.hbm %s3507_s17, 256  ;;  %s2801_s29 = scalar_lea.hbm %s3624_s24, 512 }
 0x460   : > { %p2798_p0 = scmp.ne.s32.totalorder %s3507_s17, %s2797_s12  ;;  %p2802_p6 = scmp.lt.u32.totalorder %s3507_s17, %s3624_s24 }
 0x461   : > { %p2803_p12 = scmp.lt.u32.totalorder %s2801_s29, %s2797_s12  ;;  %p2805_p11 = scmp.lt.u32.totalorder %s2797_s12, %s3507_s17 }
 0x462   : > { %p2799_p2 = pnand %p2798_p0, %p3144_p5 }
 0x463   : > { %p2804_p1 = por %p2803_p12, %p2802_p6 }
 0x464   : > { %p2800_p13 = pneg %p2799_p2 }
 0x465   : > { %p2806_p4 = por %p2805_p11, %p2804_p1 }
 0x467   : > { %p2807_p8 = pnand %p2806_p4, %p2800_p13 }
 0x469   : > { %2810 = shalt.err (!%p2807_p8)
}
 0x46a   : > { %2250 = dma.vmem_to_hbm [thread:$0]  (%p3144_p5), %s3501_s16, 256, %s3507_s17, %s3472_s26, %s3616_s8, %s3616_s8, %s3622_s9  }
 0x46b PF: > { %s3625_s20 = sld [smem:[#allocation23_spill]]  ;;  %s3626_s30 = sld [smem:[#allocation24_spill]] }
 0x46c   : > { %p3628_p3 = scmp.ge.s32.totalorder %s2881_s22, 2 }
 0x471   : > { %s1830_s27 = sand.u32 1, %s3625_s20   ;;  %p3627_p10 = scmp.ne.s32.totalorder %s3626_s30, 0 }
 0x472   : > { %s1831_s12 = scalar_lea.sflag [#allocation4], %s1830_s27 }
 0x473   : > { %p2274_p7 = pnand %p3628_p3, %p3627_p10 }
 0x475   : > { %2848 = dma.done.wait (!%p2274_p7), %s1831_s12, 256  }
 0x476   : > { %2850 = vsyncadd (!%p2274_p7), %s1831_s12, 4294967040  ;;  %s3629_s28 = sadd.s32 4294967294, %s2881_s22  }
 0x477   : > { %s1839_s13 = sand.u32 1, %s3629_s28  }
 0x478   : > { %s1840_s29 = scalar_lea.sflag [#allocation13], %s1839_s13 }
 0x479   : > { %2852 = dma.done.wait (!%p2274_p7), %s1840_s29, 512  }
 0x47a   : > { %2854 = vsyncadd (!%p2274_p7), %s1840_s29, 4294966784  ;;  %s1858_s23 = scalar_lea.sflag [#allocation16], %s1830_s27 }
 0x47b   : > { %2856 = dma.done.wait (!%p2274_p7), %s1858_s23, 256  }
 0x47c   : > { %2858 = vsyncadd (!%p2274_p7), %s1858_s23, 4294967040  ;;  %s36_s22 = sadd.s32 1, %s2881_s22   ;;  %s3630_s17 = smov %s2865_s18 }
 0x47d   : > { %p33_p5 = scmp.ge.s32.totalorder %s36_s22, 4   ;;  %s3631_s18 = smov %s2869_s19 }
 0x47e   : > { %s3632_s19 = smov %s3153_s10  ;;  %s3633_s20 = smov %s2877_s21 }
 0x47f   : > { %s3634_s21 = smov %s3636_s15  ;;  %35 = sbr.rel (!%p33_p5) target bundleno = 18 (0x12), region = 164 }
 0x486   :  { %1863 = vsyncpa [#allocation3], 1 }
 0x487   :  { %1865 = vsyncpa [#allocation3 + $0x1], 1 }
 0x488   :  { %1866 = vsyncpa [#allocation6], 1 }
 0x489   :  { %1867 = vsyncpa [#allocation9], 1 }
 0x48a   :  { %1868 = vsyncpa [#allocation4], 1 }
 0x48b   :  { %1870 = vsyncpa [#allocation4 + $0x1], 1 }
 0x48c   :  { %1871 = vsyncpa [#allocation13], 1 }
 0x48d   :  { %1873 = vsyncpa [#allocation13 + $0x1], 1 }
 0x48e   :  { %1874 = vsyncpa [#allocation16], 1 }
 0x48f   :  { %1876 = vsyncpa [#allocation16 + $0x1], 1 }

</bundles_post_ra>
